<compile_context>
chip_gen: v6e
topology: v6e:2x2x1
jax: 0.10.0
libtpu: 0.0.40
codegen_flags: <defaults>
</compile_context>

<pallas_src>
import jax
import jax.numpy as jnp
from jax import lax
from jax.experimental import pallas as pl
from jax.experimental.pallas import tpu as pltpu


def _dy_nconv_kernel(x_ref, a_ref, o_ref, acc_ref):
    """x_ref: (C, V, TL)   a_ref: (V, TW, TL)   o_ref / acc_ref: (C, TW, TL)."""
    n_v = a_ref.shape[0]

    def term(v):
        # x slice for this v, kept broadcastable over the W (sublane) axis.
        xv = x_ref[:, pl.ds(v, 1), :].astype(jnp.float32)   # (C, 1, TL)
        av = a_ref[v].astype(jnp.float32)                   # (TW, TL)
        return xv * av[None, :, :]                          # (C, TW, TL)

    # Initialize the accumulator with the v=0 term (saves one zero-fill pass).
    acc_ref[...] = term(0)

    if n_v <= 16:
        # Small contraction: full static unroll at trace time.
        for v in range(1, n_v):
            acc_ref[...] += term(v)
    else:
        # Large contraction: visible loop keeps live ranges bounded.
        def mac(v, carry):
            acc_ref[...] += term(v)
            return carry

        lax.fori_loop(1, n_v, mac, 0)

    o_ref[...] = acc_ref[...].astype(o_ref.dtype)


def _pick_tile(dim, quantum, cap):
    """Largest multiple of `quantum` that divides `dim` and is <= cap (else dim)."""
    if dim <= cap:
        return dim
    t = (cap // quantum) * quantum
    while t >= quantum:
        if dim % t == 0:
            return t
        t -= quantum
    return dim


def dy_nconv(x, a, *, tile_w=None, tile_l=None):
    """Pallas TPU implementation of torch.einsum('ncvl,nvwl->ncwl', (x, A))."""
    n, c, v, l = x.shape
    na, va, w, la = a.shape
    assert (n, v, l) == (na, va, la), (x.shape, a.shape)

    # Lane tile (minor dim): multiple of 128 when possible -> lane-dense stores.
    # W tile caps the A / out block footprint so large graphs fit v7x VMEM.
    tl = tile_l if tile_l is not None else _pick_tile(l, 128, 512)
    tw = tile_w if tile_w is not None else _pick_tile(w, 8, 256)
    assert l % tl == 0 and w % tw == 0, (l, tl, w, tw)

    # Grid order: w-blocks innermost so the x block (independent of wb) is not
    # re-fetched while sweeping the output-node tiles.
    grid = (n, l // tl, w // tw)

    return pl.pallas_call(
        _dy_nconv_kernel,
        out_shape=jax.ShapeDtypeStruct((n, c, w, l), x.dtype),
        grid_spec=pltpu.PrefetchScalarGridSpec(
            num_scalar_prefetch=0,
            grid=grid,
            in_specs=[
                pl.BlockSpec((None, c, v, tl), lambda b, lb, wb: (b, 0, 0, lb)),
                pl.BlockSpec((None, v, tw, tl), lambda b, lb, wb: (b, 0, wb, lb)),
            ],
            out_specs=pl.BlockSpec((None, c, tw, tl),
                                   lambda b, lb, wb: (b, 0, wb, lb)),
            scratch_shapes=[pltpu.VMEM((c, tw, tl), jnp.float32)],
        ),
        compiler_params=pltpu.CompilerParams(
            dimension_semantics=("parallel", "parallel", "parallel"),
        ),
    )(x, a)


def _reference(x, a):
    return jnp.einsum('ncvl,nvwl->ncwl', x, a)


if __name__ == "__main__":
    key = jax.random.PRNGKey(0)
    k1, k2, k3, k4 = jax.random.split(key, 4)

    # Small shapes consistent with the module:
    #   x: (batch, channels, num_nodes, seq) ; A: (batch, num_nodes, num_nodes', seq)
    N, C, V, W, L = 2, 4, 16, 24, 8
    x = jax.random.normal(k1, (N, C, V, L), dtype=jnp.float32)
    A = jax.random.normal(k2, (N, V, W, L), dtype=jnp.float32)

    out = jax.block_until_ready(dy_nconv(x, A))
    ref = _reference(x, A)
    assert out.shape == (N, C, W, L)
    assert bool(jnp.allclose(out, ref, atol=1e-4, rtol=1e-4)), \
        float(jnp.max(jnp.abs(out - ref)))

    # Second config exercising the tiled grid (multiple l / w tiles) and the
    # fori_loop contraction path (V > 16).
    N2, C2, V2, W2, L2 = 1, 4, 32, 16, 256
    x2 = jax.random.normal(k3, (N2, C2, V2, L2), dtype=jnp.float32)
    A2 = jax.random.normal(k4, (N2, V2, W2, L2), dtype=jnp.float32)
    out2 = jax.block_until_ready(dy_nconv(x2, A2, tile_w=8, tile_l=128))
    ref2 = _reference(x2, A2)
    assert bool(jnp.allclose(out2, ref2, atol=1e-4, rtol=1e-4)), \
        float(jnp.max(jnp.abs(out2 - ref2)))

    print("KERNEL_OK")
</pallas_src>

<mosaic_0001>
module attributes {stable_mosaic.version = 11 : i64} {
  func.func @_dy_nconv_kernel(%arg0: i32, %arg1: i32, %arg2: i32, %arg3: memref<1x4x16x8xf32, #tpu.memory_space<vmem>>, %arg4: memref<1x16x24x8xf32, #tpu.memory_space<vmem>>, %arg5: memref<1x4x24x8xf32, #tpu.memory_space<vmem>>, %arg6: memref<4x24x8xf32, #tpu.memory_space<vmem>>) attributes {dimension_semantics = [#tpu.dimension_semantics<parallel>, #tpu.dimension_semantics<parallel>, #tpu.dimension_semantics<parallel>], iteration_bounds = array<i64: 2, 1, 1>, scalar_prefetch = 0 : i64, scratch_operands = 1 : i64, tpu.core_type = #tpu.core_type<tc>, window_params = [{transform_indices = @transform_0, window_bounds = array<i64: 1, 4, 16, 8>}, {transform_indices = @transform_1, window_bounds = array<i64: 1, 16, 24, 8>}, {transform_indices = @transform_2, window_bounds = array<i64: 1, 4, 24, 8>}]} {
    %c0 = arith.constant 0 : index
    %c0_0 = arith.constant 0 : index
    %c0_1 = arith.constant 0 : index
    %c0_2 = arith.constant 0 : index
    %0 = vector.load %arg3[%c0, %c0_0, %c0_1, %c0_2] : memref<1x4x16x8xf32, #tpu.memory_space<vmem>>, vector<1x4x1x8xf32>
    %1 = vector.shape_cast %0 : vector<1x4x1x8xf32> to vector<4x1x8xf32>
    %c0_3 = arith.constant 0 : index
    %c0_4 = arith.constant 0 : index
    %c0_5 = arith.constant 0 : index
    %c0_6 = arith.constant 0 : index
    %2 = vector.load %arg4[%c0_3, %c0_4, %c0_5, %c0_6] : memref<1x16x24x8xf32, #tpu.memory_space<vmem>>, vector<1x1x24x8xf32>
    %3 = vector.shape_cast %2 : vector<1x1x24x8xf32> to vector<24x8xf32>
    %4 = vector.shape_cast %3 : vector<24x8xf32> to vector<1x24x8xf32>
    %5 = vector.broadcast %1 : vector<4x1x8xf32> to vector<4x24x8xf32>
    %6 = vector.broadcast %4 : vector<1x24x8xf32> to vector<4x24x8xf32>
    %7 = arith.mulf %5, %6 : vector<4x24x8xf32>
    %c0_7 = arith.constant 0 : index
    %c0_8 = arith.constant 0 : index
    %c0_9 = arith.constant 0 : index
    %8 = vector.load %arg6[%c0_7, %c0_8, %c0_9] : memref<4x24x8xf32, #tpu.memory_space<vmem>>, vector<4x24x8xf32>
    tpu.vector_store %arg6[%c0_7, %c0_8, %c0_9], %7 {strides = array<i32>} : memref<4x24x8xf32, #tpu.memory_space<vmem>>, vector<4x24x8xf32>,
    %c0_10 = arith.constant 0 : index
    %c0_11 = arith.constant 0 : index
    %c0_12 = arith.constant 0 : index
    %9 = vector.load %arg6[%c0_10, %c0_11, %c0_12] : memref<4x24x8xf32, #tpu.memory_space<vmem>>, vector<4x24x8xf32>
    %c0_13 = arith.constant 0 : index
    %c0_14 = arith.constant 0 : index
    %c1 = arith.constant 1 : index
    %c0_15 = arith.constant 0 : index
    %10 = vector.load %arg3[%c0_13, %c0_14, %c1, %c0_15] : memref<1x4x16x8xf32, #tpu.memory_space<vmem>>, vector<1x4x1x8xf32>
    %11 = vector.shape_cast %10 : vector<1x4x1x8xf32> to vector<4x1x8xf32>
    %c0_16 = arith.constant 0 : index
    %c1_17 = arith.constant 1 : index
    %c0_18 = arith.constant 0 : index
    %c0_19 = arith.constant 0 : index
    %12 = vector.load %arg4[%c0_16, %c1_17, %c0_18, %c0_19] : memref<1x16x24x8xf32, #tpu.memory_space<vmem>>, vector<1x1x24x8xf32>
    %13 = vector.shape_cast %12 : vector<1x1x24x8xf32> to vector<24x8xf32>
    %14 = vector.shape_cast %13 : vector<24x8xf32> to vector<1x24x8xf32>
    %15 = vector.broadcast %11 : vector<4x1x8xf32> to vector<4x24x8xf32>
    %16 = vector.broadcast %14 : vector<1x24x8xf32> to vector<4x24x8xf32>
    %17 = arith.mulf %15, %16 : vector<4x24x8xf32>
    %18 = arith.addf %9, %17 : vector<4x24x8xf32>
    %c0_20 = arith.constant 0 : index
    %c0_21 = arith.constant 0 : index
    %c0_22 = arith.constant 0 : index
    %19 = vector.load %arg6[%c0_20, %c0_21, %c0_22] : memref<4x24x8xf32, #tpu.memory_space<vmem>>, vector<4x24x8xf32>
    tpu.vector_store %arg6[%c0_20, %c0_21, %c0_22], %18 {strides = array<i32>} : memref<4x24x8xf32, #tpu.memory_space<vmem>>, vector<4x24x8xf32>,
    %c0_23 = arith.constant 0 : index
    %c0_24 = arith.constant 0 : index
    %c0_25 = arith.constant 0 : index
    %20 = vector.load %arg6[%c0_23, %c0_24, %c0_25] : memref<4x24x8xf32, #tpu.memory_space<vmem>>, vector<4x24x8xf32>
    %c0_26 = arith.constant 0 : index
    %c0_27 = arith.constant 0 : index
    %c2 = arith.constant 2 : index
    %c0_28 = arith.constant 0 : index
    %21 = vector.load %arg3[%c0_26, %c0_27, %c2, %c0_28] : memref<1x4x16x8xf32, #tpu.memory_space<vmem>>, vector<1x4x1x8xf32>
    %22 = vector.shape_cast %21 : vector<1x4x1x8xf32> to vector<4x1x8xf32>
    %c0_29 = arith.constant 0 : index
    %c2_30 = arith.constant 2 : index
    %c0_31 = arith.constant 0 : index
    %c0_32 = arith.constant 0 : index
    %23 = vector.load %arg4[%c0_29, %c2_30, %c0_31, %c0_32] : memref<1x16x24x8xf32, #tpu.memory_space<vmem>>, vector<1x1x24x8xf32>
    %24 = vector.shape_cast %23 : vector<1x1x24x8xf32> to vector<24x8xf32>
    %25 = vector.shape_cast %24 : vector<24x8xf32> to vector<1x24x8xf32>
    %26 = vector.broadcast %22 : vector<4x1x8xf32> to vector<4x24x8xf32>
    %27 = vector.broadcast %25 : vector<1x24x8xf32> to vector<4x24x8xf32>
    %28 = arith.mulf %26, %27 : vector<4x24x8xf32>
    %29 = arith.addf %20, %28 : vector<4x24x8xf32>
    %c0_33 = arith.constant 0 : index
    %c0_34 = arith.constant 0 : index
    %c0_35 = arith.constant 0 : index
    %30 = vector.load %arg6[%c0_33, %c0_34, %c0_35] : memref<4x24x8xf32, #tpu.memory_space<vmem>>, vector<4x24x8xf32>
    tpu.vector_store %arg6[%c0_33, %c0_34, %c0_35], %29 {strides = array<i32>} : memref<4x24x8xf32, #tpu.memory_space<vmem>>, vector<4x24x8xf32>,
    %c0_36 = arith.constant 0 : index
    %c0_37 = arith.constant 0 : index
    %c0_38 = arith.constant 0 : index
    %31 = vector.load %arg6[%c0_36, %c0_37, %c0_38] : memref<4x24x8xf32, #tpu.memory_space<vmem>>, vector<4x24x8xf32>
    %c0_39 = arith.constant 0 : index
    %c0_40 = arith.constant 0 : index
    %c3 = arith.constant 3 : index
    %c0_41 = arith.constant 0 : index
    %32 = vector.load %arg3[%c0_39, %c0_40, %c3, %c0_41] : memref<1x4x16x8xf32, #tpu.memory_space<vmem>>, vector<1x4x1x8xf32>
    %33 = vector.shape_cast %32 : vector<1x4x1x8xf32> to vector<4x1x8xf32>
    %c0_42 = arith.constant 0 : index
    %c3_43 = arith.constant 3 : index
    %c0_44 = arith.constant 0 : index
    %c0_45 = arith.constant 0 : index
    %34 = vector.load %arg4[%c0_42, %c3_43, %c0_44, %c0_45] : memref<1x16x24x8xf32, #tpu.memory_space<vmem>>, vector<1x1x24x8xf32>
    %35 = vector.shape_cast %34 : vector<1x1x24x8xf32> to vector<24x8xf32>
    %36 = vector.shape_cast %35 : vector<24x8xf32> to vector<1x24x8xf32>
    %37 = vector.broadcast %33 : vector<4x1x8xf32> to vector<4x24x8xf32>
    %38 = vector.broadcast %36 : vector<1x24x8xf32> to vector<4x24x8xf32>
    %39 = arith.mulf %37, %38 : vector<4x24x8xf32>
    %40 = arith.addf %31, %39 : vector<4x24x8xf32>
    %c0_46 = arith.constant 0 : index
    %c0_47 = arith.constant 0 : index
    %c0_48 = arith.constant 0 : index
    %41 = vector.load %arg6[%c0_46, %c0_47, %c0_48] : memref<4x24x8xf32, #tpu.memory_space<vmem>>, vector<4x24x8xf32>
    tpu.vector_store %arg6[%c0_46, %c0_47, %c0_48], %40 {strides = array<i32>} : memref<4x24x8xf32, #tpu.memory_space<vmem>>, vector<4x24x8xf32>,
    %c0_49 = arith.constant 0 : index
    %c0_50 = arith.constant 0 : index
    %c0_51 = arith.constant 0 : index
    %42 = vector.load %arg6[%c0_49, %c0_50, %c0_51] : memref<4x24x8xf32, #tpu.memory_space<vmem>>, vector<4x24x8xf32>
    %c0_52 = arith.constant 0 : index
    %c0_53 = arith.constant 0 : index
    %c4 = arith.constant 4 : index
    %c0_54 = arith.constant 0 : index
    %43 = vector.load %arg3[%c0_52, %c0_53, %c4, %c0_54] : memref<1x4x16x8xf32, #tpu.memory_space<vmem>>, vector<1x4x1x8xf32>
    %44 = vector.shape_cast %43 : vector<1x4x1x8xf32> to vector<4x1x8xf32>
    %c0_55 = arith.constant 0 : index
    %c4_56 = arith.constant 4 : index
    %c0_57 = arith.constant 0 : index
    %c0_58 = arith.constant 0 : index
    %45 = vector.load %arg4[%c0_55, %c4_56, %c0_57, %c0_58] : memref<1x16x24x8xf32, #tpu.memory_space<vmem>>, vector<1x1x24x8xf32>
    %46 = vector.shape_cast %45 : vector<1x1x24x8xf32> to vector<24x8xf32>
    %47 = vector.shape_cast %46 : vector<24x8xf32> to vector<1x24x8xf32>
    %48 = vector.broadcast %44 : vector<4x1x8xf32> to vector<4x24x8xf32>
    %49 = vector.broadcast %47 : vector<1x24x8xf32> to vector<4x24x8xf32>
    %50 = arith.mulf %48, %49 : vector<4x24x8xf32>
    %51 = arith.addf %42, %50 : vector<4x24x8xf32>
    %c0_59 = arith.constant 0 : index
    %c0_60 = arith.constant 0 : index
    %c0_61 = arith.constant 0 : index
    %52 = vector.load %arg6[%c0_59, %c0_60, %c0_61] : memref<4x24x8xf32, #tpu.memory_space<vmem>>, vector<4x24x8xf32>
    tpu.vector_store %arg6[%c0_59, %c0_60, %c0_61], %51 {strides = array<i32>} : memref<4x24x8xf32, #tpu.memory_space<vmem>>, vector<4x24x8xf32>,
    %c0_62 = arith.constant 0 : index
    %c0_63 = arith.constant 0 : index
    %c0_64 = arith.constant 0 : index
    %53 = vector.load %arg6[%c0_62, %c0_63, %c0_64] : memref<4x24x8xf32, #tpu.memory_space<vmem>>, vector<4x24x8xf32>
    %c0_65 = arith.constant 0 : index
    %c0_66 = arith.constant 0 : index
    %c5 = arith.constant 5 : index
    %c0_67 = arith.constant 0 : index
    %54 = vector.load %arg3[%c0_65, %c0_66, %c5, %c0_67] : memref<1x4x16x8xf32, #tpu.memory_space<vmem>>, vector<1x4x1x8xf32>
    %55 = vector.shape_cast %54 : vector<1x4x1x8xf32> to vector<4x1x8xf32>
    %c0_68 = arith.constant 0 : index
    %c5_69 = arith.constant 5 : index
    %c0_70 = arith.constant 0 : index
    %c0_71 = arith.constant 0 : index
    %56 = vector.load %arg4[%c0_68, %c5_69, %c0_70, %c0_71] : memref<1x16x24x8xf32, #tpu.memory_space<vmem>>, vector<1x1x24x8xf32>
    %57 = vector.shape_cast %56 : vector<1x1x24x8xf32> to vector<24x8xf32>
    %58 = vector.shape_cast %57 : vector<24x8xf32> to vector<1x24x8xf32>
    %59 = vector.broadcast %55 : vector<4x1x8xf32> to vector<4x24x8xf32>
    %60 = vector.broadcast %58 : vector<1x24x8xf32> to vector<4x24x8xf32>
    %61 = arith.mulf %59, %60 : vector<4x24x8xf32>
    %62 = arith.addf %53, %61 : vector<4x24x8xf32>
    %c0_72 = arith.constant 0 : index
    %c0_73 = arith.constant 0 : index
    %c0_74 = arith.constant 0 : index
    %63 = vector.load %arg6[%c0_72, %c0_73, %c0_74] : memref<4x24x8xf32, #tpu.memory_space<vmem>>, vector<4x24x8xf32>
    tpu.vector_store %arg6[%c0_72, %c0_73, %c0_74], %62 {strides = array<i32>} : memref<4x24x8xf32, #tpu.memory_space<vmem>>, vector<4x24x8xf32>,
    %c0_75 = arith.constant 0 : index
    %c0_76 = arith.constant 0 : index
    %c0_77 = arith.constant 0 : index
    %64 = vector.load %arg6[%c0_75, %c0_76, %c0_77] : memref<4x24x8xf32, #tpu.memory_space<vmem>>, vector<4x24x8xf32>
    %c0_78 = arith.constant 0 : index
    %c0_79 = arith.constant 0 : index
    %c6 = arith.constant 6 : index
    %c0_80 = arith.constant 0 : index
    %65 = vector.load %arg3[%c0_78, %c0_79, %c6, %c0_80] : memref<1x4x16x8xf32, #tpu.memory_space<vmem>>, vector<1x4x1x8xf32>
    %66 = vector.shape_cast %65 : vector<1x4x1x8xf32> to vector<4x1x8xf32>
    %c0_81 = arith.constant 0 : index
    %c6_82 = arith.constant 6 : index
    %c0_83 = arith.constant 0 : index
    %c0_84 = arith.constant 0 : index
    %67 = vector.load %arg4[%c0_81, %c6_82, %c0_83, %c0_84] : memref<1x16x24x8xf32, #tpu.memory_space<vmem>>, vector<1x1x24x8xf32>
    %68 = vector.shape_cast %67 : vector<1x1x24x8xf32> to vector<24x8xf32>
    %69 = vector.shape_cast %68 : vector<24x8xf32> to vector<1x24x8xf32>
    %70 = vector.broadcast %66 : vector<4x1x8xf32> to vector<4x24x8xf32>
    %71 = vector.broadcast %69 : vector<1x24x8xf32> to vector<4x24x8xf32>
    %72 = arith.mulf %70, %71 : vector<4x24x8xf32>
    %73 = arith.addf %64, %72 : vector<4x24x8xf32>
    %c0_85 = arith.constant 0 : index
    %c0_86 = arith.constant 0 : index
    %c0_87 = arith.constant 0 : index
    %74 = vector.load %arg6[%c0_85, %c0_86, %c0_87] : memref<4x24x8xf32, #tpu.memory_space<vmem>>, vector<4x24x8xf32>
    tpu.vector_store %arg6[%c0_85, %c0_86, %c0_87], %73 {strides = array<i32>} : memref<4x24x8xf32, #tpu.memory_space<vmem>>, vector<4x24x8xf32>,
    %c0_88 = arith.constant 0 : index
    %c0_89 = arith.constant 0 : index
    %c0_90 = arith.constant 0 : index
    %75 = vector.load %arg6[%c0_88, %c0_89, %c0_90] : memref<4x24x8xf32, #tpu.memory_space<vmem>>, vector<4x24x8xf32>
    %c0_91 = arith.constant 0 : index
    %c0_92 = arith.constant 0 : index
    %c7 = arith.constant 7 : index
    %c0_93 = arith.constant 0 : index
    %76 = vector.load %arg3[%c0_91, %c0_92, %c7, %c0_93] : memref<1x4x16x8xf32, #tpu.memory_space<vmem>>, vector<1x4x1x8xf32>
    %77 = vector.shape_cast %76 : vector<1x4x1x8xf32> to vector<4x1x8xf32>
    %c0_94 = arith.constant 0 : index
    %c7_95 = arith.constant 7 : index
    %c0_96 = arith.constant 0 : index
    %c0_97 = arith.constant 0 : index
    %78 = vector.load %arg4[%c0_94, %c7_95, %c0_96, %c0_97] : memref<1x16x24x8xf32, #tpu.memory_space<vmem>>, vector<1x1x24x8xf32>
    %79 = vector.shape_cast %78 : vector<1x1x24x8xf32> to vector<24x8xf32>
    %80 = vector.shape_cast %79 : vector<24x8xf32> to vector<1x24x8xf32>
    %81 = vector.broadcast %77 : vector<4x1x8xf32> to vector<4x24x8xf32>
    %82 = vector.broadcast %80 : vector<1x24x8xf32> to vector<4x24x8xf32>
    %83 = arith.mulf %81, %82 : vector<4x24x8xf32>
    %84 = arith.addf %75, %83 : vector<4x24x8xf32>
    %c0_98 = arith.constant 0 : index
    %c0_99 = arith.constant 0 : index
    %c0_100 = arith.constant 0 : index
    %85 = vector.load %arg6[%c0_98, %c0_99, %c0_100] : memref<4x24x8xf32, #tpu.memory_space<vmem>>, vector<4x24x8xf32>
    tpu.vector_store %arg6[%c0_98, %c0_99, %c0_100], %84 {strides = array<i32>} : memref<4x24x8xf32, #tpu.memory_space<vmem>>, vector<4x24x8xf32>,
    %c0_101 = arith.constant 0 : index
    %c0_102 = arith.constant 0 : index
    %c0_103 = arith.constant 0 : index
    %86 = vector.load %arg6[%c0_101, %c0_102, %c0_103] : memref<4x24x8xf32, #tpu.memory_space<vmem>>, vector<4x24x8xf32>
    %c0_104 = arith.constant 0 : index
    %c0_105 = arith.constant 0 : index
    %c8 = arith.constant 8 : index
    %c0_106 = arith.constant 0 : index
    %87 = vector.load %arg3[%c0_104, %c0_105, %c8, %c0_106] : memref<1x4x16x8xf32, #tpu.memory_space<vmem>>, vector<1x4x1x8xf32>
    %88 = vector.shape_cast %87 : vector<1x4x1x8xf32> to vector<4x1x8xf32>
    %c0_107 = arith.constant 0 : index
    %c8_108 = arith.constant 8 : index
    %c0_109 = arith.constant 0 : index
    %c0_110 = arith.constant 0 : index
    %89 = vector.load %arg4[%c0_107, %c8_108, %c0_109, %c0_110] : memref<1x16x24x8xf32, #tpu.memory_space<vmem>>, vector<1x1x24x8xf32>
    %90 = vector.shape_cast %89 : vector<1x1x24x8xf32> to vector<24x8xf32>
    %91 = vector.shape_cast %90 : vector<24x8xf32> to vector<1x24x8xf32>
    %92 = vector.broadcast %88 : vector<4x1x8xf32> to vector<4x24x8xf32>
    %93 = vector.broadcast %91 : vector<1x24x8xf32> to vector<4x24x8xf32>
    %94 = arith.mulf %92, %93 : vector<4x24x8xf32>
    %95 = arith.addf %86, %94 : vector<4x24x8xf32>
    %c0_111 = arith.constant 0 : index
    %c0_112 = arith.constant 0 : index
    %c0_113 = arith.constant 0 : index
    %96 = vector.load %arg6[%c0_111, %c0_112, %c0_113] : memref<4x24x8xf32, #tpu.memory_space<vmem>>, vector<4x24x8xf32>
    tpu.vector_store %arg6[%c0_111, %c0_112, %c0_113], %95 {strides = array<i32>} : memref<4x24x8xf32, #tpu.memory_space<vmem>>, vector<4x24x8xf32>,
    %c0_114 = arith.constant 0 : index
    %c0_115 = arith.constant 0 : index
    %c0_116 = arith.constant 0 : index
    %97 = vector.load %arg6[%c0_114, %c0_115, %c0_116] : memref<4x24x8xf32, #tpu.memory_space<vmem>>, vector<4x24x8xf32>
    %c0_117 = arith.constant 0 : index
    %c0_118 = arith.constant 0 : index
    %c9 = arith.constant 9 : index
    %c0_119 = arith.constant 0 : index
    %98 = vector.load %arg3[%c0_117, %c0_118, %c9, %c0_119] : memref<1x4x16x8xf32, #tpu.memory_space<vmem>>, vector<1x4x1x8xf32>
    %99 = vector.shape_cast %98 : vector<1x4x1x8xf32> to vector<4x1x8xf32>
    %c0_120 = arith.constant 0 : index
    %c9_121 = arith.constant 9 : index
    %c0_122 = arith.constant 0 : index
    %c0_123 = arith.constant 0 : index
    %100 = vector.load %arg4[%c0_120, %c9_121, %c0_122, %c0_123] : memref<1x16x24x8xf32, #tpu.memory_space<vmem>>, vector<1x1x24x8xf32>
    %101 = vector.shape_cast %100 : vector<1x1x24x8xf32> to vector<24x8xf32>
    %102 = vector.shape_cast %101 : vector<24x8xf32> to vector<1x24x8xf32>
    %103 = vector.broadcast %99 : vector<4x1x8xf32> to vector<4x24x8xf32>
    %104 = vector.broadcast %102 : vector<1x24x8xf32> to vector<4x24x8xf32>
    %105 = arith.mulf %103, %104 : vector<4x24x8xf32>
    %106 = arith.addf %97, %105 : vector<4x24x8xf32>
    %c0_124 = arith.constant 0 : index
    %c0_125 = arith.constant 0 : index
    %c0_126 = arith.constant 0 : index
    %107 = vector.load %arg6[%c0_124, %c0_125, %c0_126] : memref<4x24x8xf32, #tpu.memory_space<vmem>>, vector<4x24x8xf32>
    tpu.vector_store %arg6[%c0_124, %c0_125, %c0_126], %106 {strides = array<i32>} : memref<4x24x8xf32, #tpu.memory_space<vmem>>, vector<4x24x8xf32>,
    %c0_127 = arith.constant 0 : index
    %c0_128 = arith.constant 0 : index
    %c0_129 = arith.constant 0 : index
    %108 = vector.load %arg6[%c0_127, %c0_128, %c0_129] : memref<4x24x8xf32, #tpu.memory_space<vmem>>, vector<4x24x8xf32>
    %c0_130 = arith.constant 0 : index
    %c0_131 = arith.constant 0 : index
    %c10 = arith.constant 10 : index
    %c0_132 = arith.constant 0 : index
    %109 = vector.load %arg3[%c0_130, %c0_131, %c10, %c0_132] : memref<1x4x16x8xf32, #tpu.memory_space<vmem>>, vector<1x4x1x8xf32>
    %110 = vector.shape_cast %109 : vector<1x4x1x8xf32> to vector<4x1x8xf32>
    %c0_133 = arith.constant 0 : index
    %c10_134 = arith.constant 10 : index
    %c0_135 = arith.constant 0 : index
    %c0_136 = arith.constant 0 : index
    %111 = vector.load %arg4[%c0_133, %c10_134, %c0_135, %c0_136] : memref<1x16x24x8xf32, #tpu.memory_space<vmem>>, vector<1x1x24x8xf32>
    %112 = vector.shape_cast %111 : vector<1x1x24x8xf32> to vector<24x8xf32>
    %113 = vector.shape_cast %112 : vector<24x8xf32> to vector<1x24x8xf32>
    %114 = vector.broadcast %110 : vector<4x1x8xf32> to vector<4x24x8xf32>
    %115 = vector.broadcast %113 : vector<1x24x8xf32> to vector<4x24x8xf32>
    %116 = arith.mulf %114, %115 : vector<4x24x8xf32>
    %117 = arith.addf %108, %116 : vector<4x24x8xf32>
    %c0_137 = arith.constant 0 : index
    %c0_138 = arith.constant 0 : index
    %c0_139 = arith.constant 0 : index
    %118 = vector.load %arg6[%c0_137, %c0_138, %c0_139] : memref<4x24x8xf32, #tpu.memory_space<vmem>>, vector<4x24x8xf32>
    tpu.vector_store %arg6[%c0_137, %c0_138, %c0_139], %117 {strides = array<i32>} : memref<4x24x8xf32, #tpu.memory_space<vmem>>, vector<4x24x8xf32>,
    %c0_140 = arith.constant 0 : index
    %c0_141 = arith.constant 0 : index
    %c0_142 = arith.constant 0 : index
    %119 = vector.load %arg6[%c0_140, %c0_141, %c0_142] : memref<4x24x8xf32, #tpu.memory_space<vmem>>, vector<4x24x8xf32>
    %c0_143 = arith.constant 0 : index
    %c0_144 = arith.constant 0 : index
    %c11 = arith.constant 11 : index
    %c0_145 = arith.constant 0 : index
    %120 = vector.load %arg3[%c0_143, %c0_144, %c11, %c0_145] : memref<1x4x16x8xf32, #tpu.memory_space<vmem>>, vector<1x4x1x8xf32>
    %121 = vector.shape_cast %120 : vector<1x4x1x8xf32> to vector<4x1x8xf32>
    %c0_146 = arith.constant 0 : index
    %c11_147 = arith.constant 11 : index
    %c0_148 = arith.constant 0 : index
    %c0_149 = arith.constant 0 : index
    %122 = vector.load %arg4[%c0_146, %c11_147, %c0_148, %c0_149] : memref<1x16x24x8xf32, #tpu.memory_space<vmem>>, vector<1x1x24x8xf32>
    %123 = vector.shape_cast %122 : vector<1x1x24x8xf32> to vector<24x8xf32>
    %124 = vector.shape_cast %123 : vector<24x8xf32> to vector<1x24x8xf32>
    %125 = vector.broadcast %121 : vector<4x1x8xf32> to vector<4x24x8xf32>
    %126 = vector.broadcast %124 : vector<1x24x8xf32> to vector<4x24x8xf32>
    %127 = arith.mulf %125, %126 : vector<4x24x8xf32>
    %128 = arith.addf %119, %127 : vector<4x24x8xf32>
    %c0_150 = arith.constant 0 : index
    %c0_151 = arith.constant 0 : index
    %c0_152 = arith.constant 0 : index
    %129 = vector.load %arg6[%c0_150, %c0_151, %c0_152] : memref<4x24x8xf32, #tpu.memory_space<vmem>>, vector<4x24x8xf32>
    tpu.vector_store %arg6[%c0_150, %c0_151, %c0_152], %128 {strides = array<i32>} : memref<4x24x8xf32, #tpu.memory_space<vmem>>, vector<4x24x8xf32>,
    %c0_153 = arith.constant 0 : index
    %c0_154 = arith.constant 0 : index
    %c0_155 = arith.constant 0 : index
    %130 = vector.load %arg6[%c0_153, %c0_154, %c0_155] : memref<4x24x8xf32, #tpu.memory_space<vmem>>, vector<4x24x8xf32>
    %c0_156 = arith.constant 0 : index
    %c0_157 = arith.constant 0 : index
    %c12 = arith.constant 12 : index
    %c0_158 = arith.constant 0 : index
    %131 = vector.load %arg3[%c0_156, %c0_157, %c12, %c0_158] : memref<1x4x16x8xf32, #tpu.memory_space<vmem>>, vector<1x4x1x8xf32>
    %132 = vector.shape_cast %131 : vector<1x4x1x8xf32> to vector<4x1x8xf32>
    %c0_159 = arith.constant 0 : index
    %c12_160 = arith.constant 12 : index
    %c0_161 = arith.constant 0 : index
    %c0_162 = arith.constant 0 : index
    %133 = vector.load %arg4[%c0_159, %c12_160, %c0_161, %c0_162] : memref<1x16x24x8xf32, #tpu.memory_space<vmem>>, vector<1x1x24x8xf32>
    %134 = vector.shape_cast %133 : vector<1x1x24x8xf32> to vector<24x8xf32>
    %135 = vector.shape_cast %134 : vector<24x8xf32> to vector<1x24x8xf32>
    %136 = vector.broadcast %132 : vector<4x1x8xf32> to vector<4x24x8xf32>
    %137 = vector.broadcast %135 : vector<1x24x8xf32> to vector<4x24x8xf32>
    %138 = arith.mulf %136, %137 : vector<4x24x8xf32>
    %139 = arith.addf %130, %138 : vector<4x24x8xf32>
    %c0_163 = arith.constant 0 : index
    %c0_164 = arith.constant 0 : index
    %c0_165 = arith.constant 0 : index
    %140 = vector.load %arg6[%c0_163, %c0_164, %c0_165] : memref<4x24x8xf32, #tpu.memory_space<vmem>>, vector<4x24x8xf32>
    tpu.vector_store %arg6[%c0_163, %c0_164, %c0_165], %139 {strides = array<i32>} : memref<4x24x8xf32, #tpu.memory_space<vmem>>, vector<4x24x8xf32>,
    %c0_166 = arith.constant 0 : index
    %c0_167 = arith.constant 0 : index
    %c0_168 = arith.constant 0 : index
    %141 = vector.load %arg6[%c0_166, %c0_167, %c0_168] : memref<4x24x8xf32, #tpu.memory_space<vmem>>, vector<4x24x8xf32>
    %c0_169 = arith.constant 0 : index
    %c0_170 = arith.constant 0 : index
    %c13 = arith.constant 13 : index
    %c0_171 = arith.constant 0 : index
    %142 = vector.load %arg3[%c0_169, %c0_170, %c13, %c0_171] : memref<1x4x16x8xf32, #tpu.memory_space<vmem>>, vector<1x4x1x8xf32>
    %143 = vector.shape_cast %142 : vector<1x4x1x8xf32> to vector<4x1x8xf32>
    %c0_172 = arith.constant 0 : index
    %c13_173 = arith.constant 13 : index
    %c0_174 = arith.constant 0 : index
    %c0_175 = arith.constant 0 : index
    %144 = vector.load %arg4[%c0_172, %c13_173, %c0_174, %c0_175] : memref<1x16x24x8xf32, #tpu.memory_space<vmem>>, vector<1x1x24x8xf32>
    %145 = vector.shape_cast %144 : vector<1x1x24x8xf32> to vector<24x8xf32>
    %146 = vector.shape_cast %145 : vector<24x8xf32> to vector<1x24x8xf32>
    %147 = vector.broadcast %143 : vector<4x1x8xf32> to vector<4x24x8xf32>
    %148 = vector.broadcast %146 : vector<1x24x8xf32> to vector<4x24x8xf32>
    %149 = arith.mulf %147, %148 : vector<4x24x8xf32>
    %150 = arith.addf %141, %149 : vector<4x24x8xf32>
    %c0_176 = arith.constant 0 : index
    %c0_177 = arith.constant 0 : index
    %c0_178 = arith.constant 0 : index
    %151 = vector.load %arg6[%c0_176, %c0_177, %c0_178] : memref<4x24x8xf32, #tpu.memory_space<vmem>>, vector<4x24x8xf32>
    tpu.vector_store %arg6[%c0_176, %c0_177, %c0_178], %150 {strides = array<i32>} : memref<4x24x8xf32, #tpu.memory_space<vmem>>, vector<4x24x8xf32>,
    %c0_179 = arith.constant 0 : index
    %c0_180 = arith.constant 0 : index
    %c0_181 = arith.constant 0 : index
    %152 = vector.load %arg6[%c0_179, %c0_180, %c0_181] : memref<4x24x8xf32, #tpu.memory_space<vmem>>, vector<4x24x8xf32>
    %c0_182 = arith.constant 0 : index
    %c0_183 = arith.constant 0 : index
    %c14 = arith.constant 14 : index
    %c0_184 = arith.constant 0 : index
    %153 = vector.load %arg3[%c0_182, %c0_183, %c14, %c0_184] : memref<1x4x16x8xf32, #tpu.memory_space<vmem>>, vector<1x4x1x8xf32>
    %154 = vector.shape_cast %153 : vector<1x4x1x8xf32> to vector<4x1x8xf32>
    %c0_185 = arith.constant 0 : index
    %c14_186 = arith.constant 14 : index
    %c0_187 = arith.constant 0 : index
    %c0_188 = arith.constant 0 : index
    %155 = vector.load %arg4[%c0_185, %c14_186, %c0_187, %c0_188] : memref<1x16x24x8xf32, #tpu.memory_space<vmem>>, vector<1x1x24x8xf32>
    %156 = vector.shape_cast %155 : vector<1x1x24x8xf32> to vector<24x8xf32>
    %157 = vector.shape_cast %156 : vector<24x8xf32> to vector<1x24x8xf32>
    %158 = vector.broadcast %154 : vector<4x1x8xf32> to vector<4x24x8xf32>
    %159 = vector.broadcast %157 : vector<1x24x8xf32> to vector<4x24x8xf32>
    %160 = arith.mulf %158, %159 : vector<4x24x8xf32>
    %161 = arith.addf %152, %160 : vector<4x24x8xf32>
    %c0_189 = arith.constant 0 : index
    %c0_190 = arith.constant 0 : index
    %c0_191 = arith.constant 0 : index
    %162 = vector.load %arg6[%c0_189, %c0_190, %c0_191] : memref<4x24x8xf32, #tpu.memory_space<vmem>>, vector<4x24x8xf32>
    tpu.vector_store %arg6[%c0_189, %c0_190, %c0_191], %161 {strides = array<i32>} : memref<4x24x8xf32, #tpu.memory_space<vmem>>, vector<4x24x8xf32>,
    %c0_192 = arith.constant 0 : index
    %c0_193 = arith.constant 0 : index
    %c0_194 = arith.constant 0 : index
    %163 = vector.load %arg6[%c0_192, %c0_193, %c0_194] : memref<4x24x8xf32, #tpu.memory_space<vmem>>, vector<4x24x8xf32>
    %c0_195 = arith.constant 0 : index
    %c0_196 = arith.constant 0 : index
    %c15 = arith.constant 15 : index
    %c0_197 = arith.constant 0 : index
    %164 = vector.load %arg3[%c0_195, %c0_196, %c15, %c0_197] : memref<1x4x16x8xf32, #tpu.memory_space<vmem>>, vector<1x4x1x8xf32>
    %165 = vector.shape_cast %164 : vector<1x4x1x8xf32> to vector<4x1x8xf32>
    %c0_198 = arith.constant 0 : index
    %c15_199 = arith.constant 15 : index
    %c0_200 = arith.constant 0 : index
    %c0_201 = arith.constant 0 : index
    %166 = vector.load %arg4[%c0_198, %c15_199, %c0_200, %c0_201] : memref<1x16x24x8xf32, #tpu.memory_space<vmem>>, vector<1x1x24x8xf32>
    %167 = vector.shape_cast %166 : vector<1x1x24x8xf32> to vector<24x8xf32>
    %168 = vector.shape_cast %167 : vector<24x8xf32> to vector<1x24x8xf32>
    %169 = vector.broadcast %165 : vector<4x1x8xf32> to vector<4x24x8xf32>
    %170 = vector.broadcast %168 : vector<1x24x8xf32> to vector<4x24x8xf32>
    %171 = arith.mulf %169, %170 : vector<4x24x8xf32>
    %172 = arith.addf %163, %171 : vector<4x24x8xf32>
    %c0_202 = arith.constant 0 : index
    %c0_203 = arith.constant 0 : index
    %c0_204 = arith.constant 0 : index
    %173 = vector.load %arg6[%c0_202, %c0_203, %c0_204] : memref<4x24x8xf32, #tpu.memory_space<vmem>>, vector<4x24x8xf32>
    tpu.vector_store %arg6[%c0_202, %c0_203, %c0_204], %172 {strides = array<i32>} : memref<4x24x8xf32, #tpu.memory_space<vmem>>, vector<4x24x8xf32>,
    %c0_205 = arith.constant 0 : index
    %c0_206 = arith.constant 0 : index
    %c0_207 = arith.constant 0 : index
    %174 = vector.load %arg6[%c0_205, %c0_206, %c0_207] : memref<4x24x8xf32, #tpu.memory_space<vmem>>, vector<4x24x8xf32>
    %c0_208 = arith.constant 0 : index
    %c0_209 = arith.constant 0 : index
    %c0_210 = arith.constant 0 : index
    %c0_211 = arith.constant 0 : index
    %175 = vector.load %arg5[%c0_208, %c0_209, %c0_210, %c0_211] : memref<1x4x24x8xf32, #tpu.memory_space<vmem>>, vector<1x4x24x8xf32>
    %176 = vector.shape_cast %175 : vector<1x4x24x8xf32> to vector<4x24x8xf32>
    %177 = vector.shape_cast %174 : vector<4x24x8xf32> to vector<1x4x24x8xf32>
    tpu.vector_store %arg5[%c0_208, %c0_209, %c0_210, %c0_211], %177 {strides = array<i32>} : memref<1x4x24x8xf32, #tpu.memory_space<vmem>>, vector<1x4x24x8xf32>,
    return
  }
  func.func @transform_0(%arg0: i32, %arg1: i32, %arg2: i32) -> (i32, i32, i32, i32) {
    %c0_i32 = arith.constant 0 : i32
    %c0_i32_0 = arith.constant 0 : i32
    %c0_i32_1 = arith.constant 0 : i32
    return %arg0, %c0_i32, %c0_i32_0, %arg1 : i32, i32, i32, i32
  }
  func.func @transform_1(%arg0: i32, %arg1: i32, %arg2: i32) -> (i32, i32, i32, i32) {
    %c0_i32 = arith.constant 0 : i32
    %c0_i32_0 = arith.constant 0 : i32
    return %arg0, %c0_i32, %arg2, %arg1 : i32, i32, i32, i32
  }
  func.func @transform_2(%arg0: i32, %arg1: i32, %arg2: i32) -> (i32, i32, i32, i32) {
    %c0_i32 = arith.constant 0 : i32
    %c0_i32_0 = arith.constant 0 : i32
    return %arg0, %c0_i32, %arg2, %arg1 : i32, i32, i32, i32
  }
}

</mosaic_0001>

<bundles_post_ra>
// kernel: tpu_custom_call.1
= control target key start
LH: loop header
LB: loop body
LE: loop exit
PB: predicated region body
PF: predicated region fallthrough
CT: control target
= control target key end

     0   :  { %s1699_s9 = smov 0   ;;  %s1701_s10 = smov 0   ;;  %s2582_s0 = inlined_call_operand.vmem [shape: f32[2,4,16,8], index: 0, kind: input, shape index: {}]   ;;  %s2583_s1 = inlined_call_operand.vmem [shape: f32[2,16,24,8], index: 1, kind: input, shape index: {}]   ;;  %s2584_s2 = inlined_call_operand.vmem [shape: f32[2,4,24,8], index: 2, kind: output, shape index: {}]  }
   0x1   :  { %s1703_s11 = smov 0  }
   0x2 LB: > { %s31_s12 = sadd.s32 1, %s1678_s10  ;;  %p1517_p0 = scmp.ge.s32.totalorder %s1682_s11, 1  ;;  %s1682_s11 = sphi %s1703_s11, %s12_s11   ;;  %s1678_s10 = sphi %s1701_s10, %s2734_s10   ;;  %s1674_s9 = sphi %s1699_s9, %s2733_s9  }
   0x3   : > { %p33_p1 = scmp.ge.s32.totalorder %s31_s12, 2  ;;  %p162_p2 = scmp.lt.s32.totalorder %s1682_s11, 3 }
   0x5   : > { %s2736_s12 = smov (%p33_p1, %s31_s12), 0  ;;  %p163_p3 = pnand %p1517_p0, %p162_p2 }
   0x7   : > { %166 = sbr.rel (%p163_p3) target bundleno = 210 (0xd2), region = 28 }
   0xc   : > { %p206_p4 = scmp.lt.s32.totalorder %s1674_s9, 1  ;;  %vm275_vm0 = vcmask 64512  }
   0xe   : > { %s2738_s9 = smov (!%p206_p4, %s1674_s9), 1 }
   0xf   : > { %s1633_s13 = sshll.u32 %s2738_s9, 6  ;;  %s1634_s14 = smul.u32 384, %s2738_s9 }
  0x10   : > { %s1724_s17 = scalar_lea.vmem %s2582_s0, %s1633_s13  ;;  %s1635_s21 = smul.u32 96, %s2738_s9 }
  0x11   : > { %s1729_s20 = scalar_lea.vmem %s2583_s1, %s1634_s14  ;;  %v1522_v0 = vld [vmem:[%s1724_s17] ss:$0 sm:$0xff]  ;;  %v1523_v1 = vld [vmem:[%s1724_s17 + $0x10] ss:$0 sm:$0xff]  ;;  %v1529_v11 = vld [vmem:[%s1724_s17 + $0x1] ss:$0 sm:$0xff] }
  0x12   : > { %v1524_v2 = vld [vmem:[%s1724_s17 + $0x20] ss:$0 sm:$0xff]  ;;  %v245_v4 = vld [vmem:[%s1729_s20 + $0x8] sm:$0xff]  ;;  %v246_v5 = vld [vmem:[%s1729_s20 + $0x10] sm:$0xff]  ;;  %s238_s24 = scalar_lea.vmem %s2584_s2, %s1635_s21 }
  0x13   : > { %v244_v3 = vld [vmem:[%s1729_s20] sm:$0xff]  ;;  %v264_v7 = vmul.f32 %v1522_v0, %v245_v4  ;;  %v265_v8 = vmul.f32 %v1522_v0, %v246_v5  ;;  %v1525_v10 = vld [vmem:[%s1724_s17 + $0x30] ss:$0 sm:$0xff]  ;;  %v1526_v12 = vld [vmem:[%s1729_s20 + $0x18] sm:$0xff]  ;;  %v267_v13 = vmul.f32 %v1523_v1, %v245_v4  ;;  %v268_v14 = vmul.f32 %v1523_v1, %v246_v5 }
  0x14   : > { %v263_v6 = vmul.f32 %v1522_v0, %v244_v3  ;;  %v266_v9 = vmul.f32 %v1523_v1, %v244_v3  ;;  %v269_v15 = vmul.f32 %v1524_v2, %v244_v3  ;;  %v270_v16 = vmul.f32 %v1524_v2, %v245_v4  ;;  %v1527_v17 = vld [vmem:[%s1729_s20 + $0x20] sm:$0xff]  ;;  %v1528_v18 = vld [vmem:[%s1729_s20 + $0x28] sm:$0xff]  ;;  %v1530_v19 = vld [vmem:[%s1724_s17 + $0x11] ss:$0 sm:$0xff] }
  0x15   : > { %277 = vst.msk [vmem:[#allocation2 + $0x8] sm:$0xff] %vm275_vm0, %v264_v7  ;;  %278 = vst.msk [vmem:[#allocation2 + $0x10] sm:$0xff] %vm275_vm0, %v265_v8  ;;  %v271_v20 = vmul.f32 %v1524_v2, %v246_v5  ;;  %v272_v21 = vmul.f32 %v1525_v10, %v244_v3  ;;  %v273_v22 = vmul.f32 %v1525_v10, %v245_v4  ;;  %v1531_v24 = vld [vmem:[%s1724_s17 + $0x21] ss:$0 sm:$0xff]  ;;  %v1532_v25 = vld [vmem:[%s1724_s17 + $0x31] ss:$0 sm:$0xff] }
  0x16   : > { %276 = vst.msk [vmem:[#allocation2] sm:$0xff] %vm275_vm0, %v263_v6  ;;  %279 = vst.msk [vmem:[#allocation2 + $0x18] sm:$0xff] %vm275_vm0, %v266_v9  ;;  %v274_v23 = vmul.f32 %v1525_v10, %v246_v5  ;;  %v1536_v26 = vld [vmem:[%s1724_s17 + $0x2] ss:$0 sm:$0xff]  ;;  %v324_v27 = vmul.f32 %v1529_v11, %v1526_v12  ;;  %v325_v28 = vmul.f32 %v1529_v11, %v1527_v17  ;;  %v1533_v31 = vld [vmem:[%s1729_s20 + $0x30] sm:$0xff] }
  0x17   : > { %280 = vst.msk [vmem:[#allocation2 + $0x20] sm:$0xff] %vm275_vm0, %v267_v13  ;;  %281 = vst.msk [vmem:[#allocation2 + $0x28] sm:$0xff] %vm275_vm0, %v268_v14  ;;  %v326_v29 = vmul.f32 %v1529_v11, %v1528_v18  ;;  %v327_v30 = vmul.f32 %v1530_v19, %v1526_v12  ;;  %v1534_v32 = vld [vmem:[%s1729_s20 + $0x38] sm:$0xff]  ;;  %v1535_v33 = vld [vmem:[%s1729_s20 + $0x40] sm:$0xff]  ;;  %v328_v34 = vmul.f32 %v1530_v19, %v1527_v17 }
  0x18   : > { %282 = vst.msk [vmem:[#allocation2 + $0x30] sm:$0xff] %vm275_vm0, %v269_v15  ;;  %283 = vst.msk [vmem:[#allocation2 + $0x38] sm:$0xff] %vm275_vm0, %v270_v16  ;;  %v329_v35 = vmul.f32 %v1530_v19, %v1528_v18  ;;  %v330_v36 = vmul.f32 %v1531_v24, %v1526_v12  ;;  %v331_v37 = vmul.f32 %v1531_v24, %v1527_v17  ;;  %v1537_v38 = vld [vmem:[%s1724_s17 + $0x12] ss:$0 sm:$0xff]  ;;  %v1538_v39 = vld [vmem:[%s1724_s17 + $0x22] ss:$0 sm:$0xff] }
  0x19   : > { %284 = vst.msk [vmem:[#allocation2 + $0x40] sm:$0xff] %vm275_vm0, %v271_v20  ;;  %285 = vst.msk [vmem:[#allocation2 + $0x48] sm:$0xff] %vm275_vm0, %v272_v21  ;;  %v332_v40 = vmul.f32 %v1531_v24, %v1528_v18  ;;  %v333_v41 = vmul.f32 %v1532_v25, %v1526_v12  ;;  %v334_v42 = vmul.f32 %v1532_v25, %v1527_v17  ;;  %v1539_v44 = vld [vmem:[%s1724_s17 + $0x32] ss:$0 sm:$0xff]  ;;  %v1543_v45 = vld [vmem:[%s1724_s17 + $0x3] ss:$0 sm:$0xff] }
  0x1a   : > { %286 = vst.msk [vmem:[#allocation2 + $0x50] sm:$0xff] %vm275_vm0, %v273_v22  ;;  %287 = vst.msk [vmem:[#allocation2 + $0x58] sm:$0xff] %vm275_vm0, %v274_v23  ;;  %v335_v43 = vmul.f32 %v1532_v25, %v1528_v18  ;;  %v1766_v46 = vld [vmem:[%s1729_s20 + $0x48] sm:$0xff]  ;;  %v1768_v47 = vmul.f32 %v1536_v26, %v1533_v31  ;;  %v1770_v48 = vmul.f32 %v1536_v26, %v1534_v32  ;;  %v1541_v51 = vld [vmem:[%s1729_s20 + $0x50] sm:$0xff] }
  0x1b   : > { %v1772_v49 = vmul.f32 %v1536_v26, %v1535_v33  ;;  %v1774_v50 = vmul.f32 %v1537_v38, %v1533_v31  ;;  %v1542_v52 = vld [vmem:[%s1729_s20 + $0x58] sm:$0xff]  ;;  %v1544_v53 = vld [vmem:[%s1724_s17 + $0x13] ss:$0 sm:$0xff]  ;;  %v1779_v54 = vmul.f32 %v1537_v38, %v1534_v32  ;;  %v1781_v55 = vmul.f32 %v1537_v38, %v1535_v33  ;;  %v1545_v62 = vld [vmem:[%s1724_s17 + $0x23] ss:$0 sm:$0xff] }
  0x1c   : > { %v1783_v56 = vmul.f32 %v1538_v39, %v1533_v31  ;;  %v1785_v57 = vmul.f32 %v1538_v39, %v1534_v32  ;;  %v1787_v58 = vmul.f32 %v1538_v39, %v1535_v33  ;;  %v1789_v59 = vmul.f32 %v1539_v44, %v1533_v31  ;;  %v289_v0 = vld [vmem:[#allocation2 + $0x8] sm:$0xff]  ;;  %v290_v1 = vld [vmem:[#allocation2 + $0x10] sm:$0xff]  ;;  %v1550_v14 = vld [vmem:[%s1724_s17 + $0x4] ss:$0 sm:$0xff] }
  0x1d   : > { %v1791_v60 = vmul.f32 %v1539_v44, %v1534_v32  ;;  %v1793_v61 = vmul.f32 %v1539_v44, %v1535_v33  ;;  %v288_v63 = vld [vmem:[#allocation2] sm:$0xff]  ;;  %v1797_v2 = vmul.f32 %v1543_v45, %v1766_v46  ;;  %v1799_v3 = vmul.f32 %v1543_v45, %v1541_v51  ;;  %v1546_v6 = vld [vmem:[%s1724_s17 + $0x33] ss:$0 sm:$0xff]  ;;  %v291_v10 = vld [vmem:[#allocation2 + $0x18] sm:$0xff] }
  0x1e   : > { %v1801_v4 = vmul.f32 %v1543_v45, %v1542_v52  ;;  %v1804_v5 = vmul.f32 %v1544_v53, %v1766_v46  ;;  %v336_v7 = vadd.f32 %v324_v27, %v288_v63  ;;  %v337_v8 = vadd.f32 %v325_v28, %v289_v0  ;;  %v292_v11 = vld [vmem:[#allocation2 + $0x20] sm:$0xff]  ;;  %v293_v12 = vld [vmem:[#allocation2 + $0x28] sm:$0xff]  ;;  %v1549_v17 = vld [vmem:[%s1729_s20 + $0x70] sm:$0xff] }
  0x1f   : > { %v338_v9 = vadd.f32 %v326_v29, %v290_v1  ;;  %v1807_v13 = vmul.f32 %v1544_v53, %v1541_v51  ;;  %v1547_v15 = vld [vmem:[%s1729_s20 + $0x60] sm:$0xff]  ;;  %v1548_v16 = vld [vmem:[%s1729_s20 + $0x68] sm:$0xff]  ;;  %v1551_v18 = vld [vmem:[%s1724_s17 + $0x14] ss:$0 sm:$0xff]  ;;  %v339_v19 = vadd.f32 %v327_v30, %v291_v10  ;;  %v340_v20 = vadd.f32 %v328_v34, %v292_v11 }
  0x20   : > { %v341_v21 = vadd.f32 %v329_v35, %v293_v12  ;;  %v294_v22 = vld [vmem:[#allocation2 + $0x30] sm:$0xff]  ;;  %v295_v23 = vld [vmem:[#allocation2 + $0x38] sm:$0xff]  ;;  %v296_v24 = vld [vmem:[#allocation2 + $0x40] sm:$0xff]  ;;  %v1814_v25 = vmul.f32 %v1544_v53, %v1542_v52  ;;  %348 = vst.msk [vmem:[#allocation2] sm:$0xff] %vm275_vm0, %v336_v7  ;;  %v1820_v32 = vmul.f32 %v1545_v62, %v1766_v46  ;;  %v1831_v38 = vmul.f32 %v1545_v62, %v1542_v52 }
  0x21   : > { %349 = vst.msk [vmem:[#allocation2 + $0x8] sm:$0xff] %vm275_vm0, %v337_v8  ;;  %350 = vst.msk [vmem:[#allocation2 + $0x10] sm:$0xff] %vm275_vm0, %v338_v9  ;;  %v342_v26 = vadd.f32 %v330_v36, %v294_v22  ;;  %v343_v27 = vadd.f32 %v331_v37, %v295_v23  ;;  %v344_v28 = vadd.f32 %v332_v40, %v296_v24  ;;  %v297_v29 = vld [vmem:[#allocation2 + $0x48] sm:$0xff]  ;;  %v298_v31 = vld [vmem:[#allocation2 + $0x50] sm:$0xff] }
  0x22   : > { %v299_v30 = vld [vmem:[#allocation2 + $0x58] sm:$0xff]  ;;  %351 = vst.msk [vmem:[#allocation2 + $0x18] sm:$0xff] %vm275_vm0, %v339_v19  ;;  %352 = vst.msk [vmem:[#allocation2 + $0x20] sm:$0xff] %vm275_vm0, %v340_v20  ;;  %v345_v33 = vadd.f32 %v333_v41, %v297_v29  ;;  %v346_v34 = vadd.f32 %v334_v42, %v298_v31  ;;  %v1825_v36 = vmul.f32 %v1545_v62, %v1541_v51  ;;  %v1552_v37 = vld [vmem:[%s1724_s17 + $0x24] ss:$0 sm:$0xff] }
  0x23   : > { %353 = vst.msk [vmem:[#allocation2 + $0x28] sm:$0xff] %vm275_vm0, %v341_v21  ;;  %v347_v35 = vadd.f32 %v335_v43, %v299_v30  ;;  %354 = vst.msk [vmem:[#allocation2 + $0x30] sm:$0xff] %vm275_vm0, %v342_v26  ;;  %v1834_v39 = vmul.f32 %v1546_v6, %v1766_v46  ;;  %v1836_v40 = vmul.f32 %v1546_v6, %v1541_v51  ;;  %v1553_v42 = vld [vmem:[%s1724_s17 + $0x34] ss:$0 sm:$0xff]  ;;  %v1557_v43 = vld [vmem:[%s1724_s17 + $0x5] ss:$0 sm:$0xff] }
  0x24   : > { %355 = vst.msk [vmem:[#allocation2 + $0x38] sm:$0xff] %vm275_vm0, %v343_v27  ;;  %356 = vst.msk [vmem:[#allocation2 + $0x40] sm:$0xff] %vm275_vm0, %v344_v28  ;;  %v1838_v41 = vmul.f32 %v1546_v6, %v1542_v52  ;;  %v1554_v44 = vld [vmem:[%s1729_s20 + $0x78] sm:$0xff]  ;;  %v1846_v45 = vmul.f32 %v1550_v14, %v1547_v15  ;;  %v1848_v53 = vmul.f32 %v1550_v14, %v1548_v16  ;;  %v1555_v52 = vld [vmem:[%s1729_s20 + $0x80] sm:$0xff] }
  0x25   : > { %357 = vst.msk [vmem:[#allocation2 + $0x48] sm:$0xff] %vm275_vm0, %v345_v33  ;;  %358 = vst.msk [vmem:[#allocation2 + $0x50] sm:$0xff] %vm275_vm0, %v346_v34  ;;  %v1850_v46 = vmul.f32 %v1550_v14, %v1549_v17  ;;  %v1852_v51 = vmul.f32 %v1551_v18, %v1547_v15  ;;  %v1556_v62 = vld [vmem:[%s1729_s20 + $0x88] sm:$0xff]  ;;  %v1558_v63 = vld [vmem:[%s1724_s17 + $0x15] ss:$0 sm:$0xff]  ;;  %v1857_v0 = vmul.f32 %v1551_v18, %v1548_v16 }
  0x26   : > { %359 = vst.msk [vmem:[#allocation2 + $0x58] sm:$0xff] %vm275_vm0, %v347_v35  ;;  %v1859_v1 = vmul.f32 %v1551_v18, %v1549_v17  ;;  %v1861_v6 = vmul.f32 %v1552_v37, %v1547_v15  ;;  %v1863_v7 = vmul.f32 %v1552_v37, %v1548_v16  ;;  %v1559_v8 = vld [vmem:[%s1724_s17 + $0x25] ss:$0 sm:$0xff]  ;;  %v1866_v9 = vmul.f32 %v1552_v37, %v1549_v17  ;;  %v1560_v21 = vld [vmem:[%s1724_s17 + $0x35] ss:$0 sm:$0xff]  ;;  %v1562_v29 = vld [vmem:[%s1729_s20 + $0x98] sm:$0xff] }
  0x27   : > { %v1868_v10 = vmul.f32 %v1553_v42, %v1547_v15  ;;  %v1870_v11 = vmul.f32 %v1553_v42, %v1548_v16  ;;  %v1872_v12 = vmul.f32 %v1553_v42, %v1549_v17  ;;  %v1874_v14 = vmul.f32 %v1557_v43, %v1554_v44  ;;  %v360_v22 = vld [vmem:[#allocation2] sm:$0xff]  ;;  %v1561_v28 = vld [vmem:[%s1729_s20 + $0x90] sm:$0xff] }
  0x28   : > { %v1876_v18 = vmul.f32 %v1557_v43, %v1555_v52  ;;  %v1878_v19 = vmul.f32 %v1557_v43, %v1556_v62  ;;  %v1880_v20 = vmul.f32 %v1558_v63, %v1554_v44  ;;  %v361_v15 = vld [vmem:[#allocation2 + $0x8] sm:$0xff]  ;;  %v362_v23 = vld [vmem:[#allocation2 + $0x10] sm:$0xff]  ;;  %v1883_v24 = vmul.f32 %v1558_v63, %v1555_v52  ;;  %v1564_v27 = vld [vmem:[%s1724_s17 + $0x6] ss:$0 sm:$0xff] }
  0x29   : > { %v1885_v16 = vmul.f32 %v1558_v63, %v1556_v62  ;;  %v1887_v17 = vmul.f32 %v1559_v8, %v1554_v44  ;;  %v1889_v26 = vmul.f32 %v1559_v8, %v1555_v52  ;;  %v1563_v31 = vld [vmem:[%s1729_s20 + $0xa0] sm:$0xff]  ;;  %v1565_v30 = vld [vmem:[%s1724_s17 + $0x16] ss:$0 sm:$0xff]  ;;  %v408_v33 = vadd.f32 %v1768_v47, %v360_v22  ;;  %v363_v37 = vld [vmem:[#allocation2 + $0x18] sm:$0xff] }
  0x2a   : > { %2585 = vst [vmem:[#allocation3_spill] sm:$0xff] %v1876_v18  ;;  %2586 = vst [vmem:[#allocation4_spill] sm:$0xff] %v1878_v19  ;;  %v409_v34 = vadd.f32 %v1770_v48, %v361_v15  ;;  %v410_v35 = vadd.f32 %v1772_v49, %v362_v23  ;;  %v364_v42 = vld [vmem:[#allocation2 + $0x20] sm:$0xff]  ;;  %v365_v43 = vld [vmem:[#allocation2 + $0x28] sm:$0xff]  ;;  %v1899_v63 = vmul.f32 %v1559_v8, %v1556_v62 }
  0x2b   : > { %2587 = vst [vmem:[#allocation5_spill] sm:$0xff] %v1880_v20  ;;  %2588 = vst [vmem:[#allocation6_spill] sm:$0xff] %v1883_v24  ;;  %v413_v24 = vadd.f32 %v1781_v55, %v365_v43  ;;  %v366_v20 = vld [vmem:[#allocation2 + $0x30] sm:$0xff]  ;;  %v367_v19 = vld [vmem:[#allocation2 + $0x38] sm:$0xff]  ;;  %v1905_v47 = vmul.f32 %v1560_v21, %v1554_v44  ;;  %v1913_v44 = vmul.f32 %v1560_v21, %v1555_v52 }
  0x2c   : > { %2589 = vst [vmem:[#allocation7_spill] sm:$0xff] %v1885_v16  ;;  %2590 = vst [vmem:[#allocation8_spill] sm:$0xff] %v1887_v17  ;;  %v1566_v16 = vld [vmem:[%s1724_s17 + $0x26] ss:$0 sm:$0xff]  ;;  %v411_v17 = vadd.f32 %v1774_v50, %v363_v37  ;;  %v414_v48 = vadd.f32 %v1783_v56, %v366_v20  ;;  %v415_v49 = vadd.f32 %v1785_v57, %v367_v19  ;;  %v370_v55 = vld [vmem:[#allocation2 + $0x50] sm:$0xff] }
  0x2d   : > { %2591 = vst [vmem:[#allocation9_spill] sm:$0xff] %v1889_v26  ;;  %v412_v26 = vadd.f32 %v1779_v54, %v364_v42  ;;  %v368_v18 = vld [vmem:[#allocation2 + $0x40] sm:$0xff]  ;;  %420 = vst.msk [vmem:[#allocation2] sm:$0xff] %vm275_vm0, %v408_v33  ;;  %v369_v54 = vld [vmem:[#allocation2 + $0x48] sm:$0xff]  ;;  %v418_v57 = vadd.f32 %v1791_v60, %v370_v55  ;;  %v1929_v22 = vmul.f32 %v1564_v27, %v1561_v28 }
  0x2e   : > { %421 = vst.msk [vmem:[#allocation2 + $0x8] sm:$0xff] %vm275_vm0, %v409_v34  ;;  %422 = vst.msk [vmem:[#allocation2 + $0x10] sm:$0xff] %vm275_vm0, %v410_v35  ;;  %v416_v50 = vadd.f32 %v1787_v58, %v368_v18  ;;  %v371_v8 = vld [vmem:[#allocation2 + $0x58] sm:$0xff]  ;;  %v417_v56 = vadd.f32 %v1789_v59, %v369_v54  ;;  %v1921_v18 = vmul.f32 %v1560_v21, %v1556_v62  ;;  %v1567_v19 = vld [vmem:[%s1724_s17 + $0x36] ss:$0 sm:$0xff] }
  0x2f   : > { %423 = vst.msk [vmem:[#allocation2 + $0x18] sm:$0xff] %vm275_vm0, %v411_v17  ;;  %424 = vst.msk [vmem:[#allocation2 + $0x20] sm:$0xff] %vm275_vm0, %v412_v26  ;;  %v419_v58 = vadd.f32 %v1793_v61, %v371_v8  ;;  %v1571_v52 = vld [vmem:[%s1724_s17 + $0x7] ss:$0 sm:$0xff]  ;;  %v1568_v20 = vld [vmem:[%s1729_s20 + $0xa8] sm:$0xff]  ;;  %v1931_v59 = vmul.f32 %v1564_v27, %v1562_v29  ;;  %v1933_v15 = vmul.f32 %v1564_v27, %v1563_v31 }
  0x30   : > { %425 = vst.msk [vmem:[#allocation2 + $0x28] sm:$0xff] %vm275_vm0, %v413_v24  ;;  %426 = vst.msk [vmem:[#allocation2 + $0x30] sm:$0xff] %vm275_vm0, %v414_v48  ;;  %v1935_v60 = vmul.f32 %v1565_v30, %v1561_v28  ;;  %v1569_v61 = vld [vmem:[%s1729_s20 + $0xb0] sm:$0xff]  ;;  %v1570_v62 = vld [vmem:[%s1729_s20 + $0xb8] sm:$0xff]  ;;  %v1943_v23 = vmul.f32 %v1565_v30, %v1562_v29  ;;  %v1945_v24 = vmul.f32 %v1565_v30, %v1563_v31 }
  0x31   : > { %427 = vst.msk [vmem:[#allocation2 + $0x38] sm:$0xff] %vm275_vm0, %v415_v49  ;;  %428 = vst.msk [vmem:[#allocation2 + $0x40] sm:$0xff] %vm275_vm0, %v416_v50  ;;  %v1572_v21 = vld [vmem:[%s1724_s17 + $0x17] ss:$0 sm:$0xff]  ;;  %v1947_v17 = vmul.f32 %v1566_v16, %v1561_v28  ;;  %v1949_v26 = vmul.f32 %v1566_v16, %v1562_v29  ;;  %v1573_v27 = vld [vmem:[%s1724_s17 + $0x27] ss:$0 sm:$0xff]  ;;  %v1952_v33 = vmul.f32 %v1566_v16, %v1563_v31 }
  0x32   : > { %429 = vst.msk [vmem:[#allocation2 + $0x48] sm:$0xff] %vm275_vm0, %v417_v56  ;;  %430 = vst.msk [vmem:[#allocation2 + $0x50] sm:$0xff] %vm275_vm0, %v418_v57  ;;  %v1954_v34 = vmul.f32 %v1567_v19, %v1561_v28  ;;  %v1956_v35 = vmul.f32 %v1567_v19, %v1562_v29  ;;  %v1958_v37 = vmul.f32 %v1567_v19, %v1563_v31  ;;  %v1574_v42 = vld [vmem:[%s1724_s17 + $0x37] ss:$0 sm:$0xff]  ;;  %v1578_v50 = vld [vmem:[%s1724_s17 + $0x8] ss:$0 sm:$0xff] }
  0x33   : > { %431 = vst.msk [vmem:[#allocation2 + $0x58] sm:$0xff] %vm275_vm0, %v419_v58  ;;  %v1961_v43 = vmul.f32 %v1571_v52, %v1568_v20  ;;  %v1963_v30 = vmul.f32 %v1571_v52, %v1569_v61  ;;  %v1965_v48 = vmul.f32 %v1571_v52, %v1570_v62  ;;  %v1967_v49 = vmul.f32 %v1572_v21, %v1568_v20  ;;  %v1971_v16 = vld [vmem:[%s1729_s20 + $0xc0] sm:$0xff]  ;;  %v1576_v55 = vld [vmem:[%s1729_s20 + $0xc8] sm:$0xff]  ;;  %v1577_v8 = vld [vmem:[%s1729_s20 + $0xd0] sm:$0xff] }
  0x34   : > { %2592 = vst [vmem:[#allocation10_spill] sm:$0xff] %v1958_v37  ;;  %v1973_v28 = vmul.f32 %v1572_v21, %v1569_v61  ;;  %v1975_v54 = vmul.f32 %v1572_v21, %v1570_v62  ;;  %v1977_v29 = vmul.f32 %v1573_v27, %v1568_v20  ;;  %v1979_v31 = vmul.f32 %v1573_v27, %v1569_v61  ;;  %v1579_v56 = vld [vmem:[%s1724_s17 + $0x18] ss:$0 sm:$0xff]  ;;  %v432_v57 = vld [vmem:[#allocation2] sm:$0xff]  ;;  %v1580_v21 = vld [vmem:[%s1724_s17 + $0x28] ss:$0 sm:$0xff] }
  0x35   : > { %2593 = vst [vmem:[#allocation11_spill] sm:$0xff] %v1961_v43  ;;  %2594 = vst [vmem:[#allocation12_spill] sm:$0xff] %v1963_v30  ;;  %v433_v58 = vld [vmem:[#allocation2 + $0x8] sm:$0xff]  ;;  %v434_v19 = vld [vmem:[#allocation2 + $0x10] sm:$0xff]  ;;  %v1984_v52 = vmul.f32 %v1573_v27, %v1570_v62  ;;  %v1997_v27 = vmul.f32 %v1578_v50, %v1971_v16 }
  0x36   : > { %2595 = vst [vmem:[#allocation13_spill] sm:$0xff] %v1965_v48  ;;  %2596 = vst [vmem:[#allocation14_spill] sm:$0xff] %v1967_v49  ;;  %v1986_v49 = vmul.f32 %v1574_v42, %v1568_v20  ;;  %v1988_v48 = vmul.f32 %v1574_v42, %v1569_v61  ;;  %v435_v30 = vld [vmem:[#allocation2 + $0x18] sm:$0xff]  ;;  %v436_v43 = vld [vmem:[#allocation2 + $0x20] sm:$0xff] }
  0x37   : > { %2597 = vst [vmem:[#allocation15_spill] sm:$0xff] %v1973_v28  ;;  %2598 = vst [vmem:[#allocation16_spill] sm:$0xff] %v1975_v54  ;;  %v1990_v28 = vmul.f32 %v1574_v42, %v1570_v62  ;;  %v482_v54 = vadd.f32 %v1801_v4, %v434_v19  ;;  %v437_v37 = vld [vmem:[#allocation2 + $0x28] sm:$0xff]  ;;  %v1581_v20 = vld [vmem:[%s1724_s17 + $0x38] ss:$0 sm:$0xff]  ;;  %v483_v61 = vadd.f32 %v1804_v5, %v435_v30 }
  0x38   : > { %2599 = vst [vmem:[#allocation17_spill] sm:$0xff] %v1977_v29  ;;  %2600 = vst [vmem:[#allocation18_spill] sm:$0xff] %v1979_v31  ;;  %v480_v29 = vadd.f32 %v1797_v2, %v432_v57  ;;  %v481_v31 = vadd.f32 %v1799_v3, %v433_v58  ;;  %v484_v62 = vadd.f32 %v1807_v13, %v436_v43  ;;  %v439_v2 = vld [vmem:[#allocation2 + $0x38] sm:$0xff]  ;;  %v440_v57 = vld [vmem:[#allocation2 + $0x40] sm:$0xff] }
  0x39   : > { %2601 = vst [vmem:[#allocation19_spill] sm:$0xff] %v1988_v48  ;;  %2602 = vst [vmem:[#allocation20_spill] sm:$0xff] %v1990_v28  ;;  %v485_v42 = vadd.f32 %v1814_v25, %v437_v37  ;;  %v438_v28 = vld [vmem:[#allocation2 + $0x30] sm:$0xff]  ;;  %v2003_v48 = vmul.f32 %v1578_v50, %v1576_v55  ;;  %v1585_v3 = vld [vmem:[%s1724_s17 + $0x9] ss:$0 sm:$0xff]  ;;  %v487_v13 = vadd.f32 %v1825_v36, %v439_v2 }
  0x3a   : > { %v1582_v4 = vld [vmem:[%s1729_s20 + $0xd8] sm:$0xff]  ;;  %492 = vst.msk [vmem:[#allocation2] sm:$0xff] %vm275_vm0, %v480_v29  ;;  %493 = vst.msk [vmem:[#allocation2 + $0x8] sm:$0xff] %vm275_vm0, %v481_v31  ;;  %v486_v5 = vadd.f32 %v1820_v32, %v438_v28  ;;  %v488_v25 = vadd.f32 %v1831_v38, %v440_v57  ;;  %v441_v37 = vld [vmem:[#allocation2 + $0x48] sm:$0xff]  ;;  %v2013_v58 = vmul.f32 %v1578_v50, %v1577_v8 }
  0x3b   : > { %494 = vst.msk [vmem:[#allocation2 + $0x10] sm:$0xff] %vm275_vm0, %v482_v54  ;;  %v442_v43 = vld [vmem:[#allocation2 + $0x50] sm:$0xff]  ;;  %v443_v30 = vld [vmem:[#allocation2 + $0x58] sm:$0xff]  ;;  %495 = vst.msk [vmem:[#allocation2 + $0x18] sm:$0xff] %vm275_vm0, %v483_v61  ;;  %v489_v54 = vadd.f32 %v1834_v39, %v441_v37  ;;  %v2022_v38 = vmul.f32 %v1579_v56, %v1971_v16  ;;  %v2030_v39 = vmul.f32 %v1579_v56, %v1576_v55 }
  0x3c   : > { %496 = vst.msk [vmem:[#allocation2 + $0x20] sm:$0xff] %vm275_vm0, %v484_v62  ;;  %497 = vst.msk [vmem:[#allocation2 + $0x28] sm:$0xff] %vm275_vm0, %v485_v42  ;;  %v490_v32 = vadd.f32 %v1836_v40, %v442_v43  ;;  %v491_v36 = vadd.f32 %v1838_v41, %v443_v30  ;;  %v1583_v28 = vld [vmem:[%s1729_s20 + $0xe0] sm:$0xff]  ;;  %v1584_v29 = vld [vmem:[%s1729_s20 + $0xe8] sm:$0xff]  ;;  %v2032_v40 = vmul.f32 %v1579_v56, %v1577_v8 }
  0x3d   : > { %v1586_v50 = vld [vmem:[%s1724_s17 + $0x19] ss:$0 sm:$0xff]  ;;  %498 = vst.msk [vmem:[#allocation2 + $0x30] sm:$0xff] %vm275_vm0, %v486_v5  ;;  %499 = vst.msk [vmem:[#allocation2 + $0x38] sm:$0xff] %vm275_vm0, %v487_v13  ;;  %v2035_v41 = vmul.f32 %v1580_v21, %v1971_v16  ;;  %v2037_v31 = vmul.f32 %v1580_v21, %v1576_v55  ;;  %v1587_v19 = vld [vmem:[%s1724_s17 + $0x29] ss:$0 sm:$0xff]  ;;  %v2043_v61 = vmul.f32 %v1580_v21, %v1577_v8 }
  0x3e   : > { %500 = vst.msk [vmem:[#allocation2 + $0x40] sm:$0xff] %vm275_vm0, %v488_v25  ;;  %501 = vst.msk [vmem:[#allocation2 + $0x48] sm:$0xff] %vm275_vm0, %v489_v54  ;;  %v2046_v56 = vmul.f32 %v1581_v20, %v1971_v16  ;;  %v2048_v62 = vmul.f32 %v1581_v20, %v1576_v55  ;;  %v2050_v42 = vmul.f32 %v1581_v20, %v1577_v8  ;;  %v1588_v2 = vld [vmem:[%s1724_s17 + $0x39] ss:$0 sm:$0xff]  ;;  %v1592_v57 = vld [vmem:[%s1724_s17 + $0xa] ss:$0 sm:$0xff] }
  0x3f   : > { %502 = vst.msk [vmem:[#allocation2 + $0x50] sm:$0xff] %vm275_vm0, %v490_v32  ;;  %503 = vst.msk [vmem:[#allocation2 + $0x58] sm:$0xff] %vm275_vm0, %v491_v36  ;;  %v2055_v5 = vld [vmem:[%s1729_s20 + $0xf0] sm:$0xff]  ;;  %v2057_v13 = vmul.f32 %v1585_v3, %v1582_v4  ;;  %v2059_v25 = vmul.f32 %v1585_v3, %v1583_v28  ;;  %v2061_v37 = vmul.f32 %v1585_v3, %v1584_v29  ;;  %v1590_v43 = vld [vmem:[%s1729_s20 + $0xf8] sm:$0xff] }
  0x40   : > { %2603 = vst [vmem:[#allocation21_spill] sm:$0xff] %v2050_v42  ;;  %v2063_v21 = vmul.f32 %v1586_v50, %v1582_v4  ;;  %v1591_v16 = vld [vmem:[%s1729_s20 + $0x100] sm:$0xff]  ;;  %v1593_v30 = vld [vmem:[%s1724_s17 + $0x1a] ss:$0 sm:$0xff]  ;;  %v2068_v55 = vmul.f32 %v1586_v50, %v1583_v28  ;;  %v2070_v8 = vmul.f32 %v1586_v50, %v1584_v29  ;;  %v2072_v20 = vmul.f32 %v1587_v19, %v1582_v4 }
  0x41   : > { %2604 = vst [vmem:[#allocation22_spill] sm:$0xff] %v2057_v13  ;;  %2605 = vst [vmem:[#allocation23_spill] sm:$0xff] %v2059_v25  ;;  %v2074_v54 = vmul.f32 %v1587_v19, %v1583_v28  ;;  %v2076_v32 = vmul.f32 %v1587_v19, %v1584_v29  ;;  %v2078_v36 = vmul.f32 %v1588_v2, %v1582_v4  ;;  %v504_v25 = vld [vmem:[#allocation2] sm:$0xff]  ;;  %v1596_v13 = vld [vmem:[%s1729_s20 + $0x108] sm:$0xff] }
  0x42   : > { %2606 = vst [vmem:[#allocation24_spill] sm:$0xff] %v2061_v37  ;;  %2607 = vst [vmem:[#allocation25_spill] sm:$0xff] %v2063_v21  ;;  %v2080_v3 = vmul.f32 %v1588_v2, %v1583_v28  ;;  %v2082_v37 = vmul.f32 %v1588_v2, %v1584_v29  ;;  %v1594_v21 = vld [vmem:[%s1724_s17 + $0x2a] ss:$0 sm:$0xff]  ;;  %v506_v50 = vld [vmem:[#allocation2 + $0x10] sm:$0xff]  ;;  %v2088_v19 = vmul.f32 %v1592_v57, %v1590_v43 }
  0x43   : > { %2608 = vst [vmem:[#allocation26_spill] sm:$0xff] %v2068_v55  ;;  %2609 = vst [vmem:[#allocation27_spill] sm:$0xff] %v2070_v8  ;;  %v505_v55 = vld [vmem:[#allocation2 + $0x8] sm:$0xff]  ;;  %v2090_v4 = vmul.f32 %v1592_v57, %v1591_v16  ;;  %v2093_v28 = vmul.f32 %v1593_v30, %v2055_v5  ;;  %v1595_v29 = vld [vmem:[%s1724_s17 + $0x3a] ss:$0 sm:$0xff]  ;;  %v552_v2 = vadd.f32 %v1846_v45, %v504_v25 }
  0x44   : > { %2610 = vst [vmem:[#allocation28_spill] sm:$0xff] %v2072_v20  ;;  %2611 = vst [vmem:[#allocation29_spill] sm:$0xff] %v2074_v54  ;;  %v2086_v20 = vmul.f32 %v1592_v57, %v2055_v5  ;;  %v509_v54 = vld [vmem:[#allocation2 + $0x28] sm:$0xff]  ;;  %v2099_v8 = vmul.f32 %v1593_v30, %v1590_v43  ;;  %v1598_v57 = vld [vmem:[%s1729_s20 + $0x118] sm:$0xff] }
  0x45   : > { %2612 = vst [vmem:[#allocation30_spill] sm:$0xff] %v2076_v32  ;;  %2613 = vst [vmem:[#allocation31_spill] sm:$0xff] %v2078_v36  ;;  %v507_v36 = vld [vmem:[#allocation2 + $0x18] sm:$0xff]  ;;  %v508_v32 = vld [vmem:[#allocation2 + $0x20] sm:$0xff]  ;;  %v557_v45 = vadd.f32 %v1859_v1, %v509_v54 }
  0x46   : > { %2614 = vst [vmem:[#allocation32_spill] sm:$0xff] %v2080_v3  ;;  %2615 = vst [vmem:[#allocation33_spill] sm:$0xff] %v2082_v37  ;;  %v553_v37 = vadd.f32 %v1848_v53, %v505_v55  ;;  %v554_v3 = vadd.f32 %v1850_v46, %v506_v50  ;;  %v555_v42 = vadd.f32 %v1852_v51, %v507_v36  ;;  %v510_v25 = vld [vmem:[#allocation2 + $0x30] sm:$0xff]  ;;  %v511_v53 = vld [vmem:[#allocation2 + $0x38] sm:$0xff] }
  0x47   : > { %2616 = vst [vmem:[#allocation34_spill] sm:$0xff] %v2086_v20  ;;  %2617 = vst [vmem:[#allocation35_spill] sm:$0xff] %v2088_v19  ;;  %v1599_v20 = vld [vmem:[%s1724_s17 + $0xb] ss:$0 sm:$0xff]  ;;  %v1597_v19 = vld [vmem:[%s1729_s20 + $0x110] sm:$0xff]  ;;  %v2109_v46 = vmul.f32 %v1593_v30, %v1591_v16  ;;  %v558_v50 = vadd.f32 %v1861_v6, %v510_v25  ;;  %v559_v51 = vadd.f32 %v1863_v7, %v511_v53 }
  0x48   : > { %2618 = vst [vmem:[#allocation36_spill] sm:$0xff] %v2090_v4  ;;  %2619 = vst [vmem:[#allocation37_spill] sm:$0xff] %v2093_v28  ;;  %v1600_v4 = vld [vmem:[%s1724_s17 + $0x1b] ss:$0 sm:$0xff]  ;;  %v556_v28 = vadd.f32 %v1857_v0, %v508_v32  ;;  %v512_v55 = vld [vmem:[#allocation2 + $0x40] sm:$0xff]  ;;  %v2118_v36 = vmul.f32 %v1594_v21, %v2055_v5 }
  0x49   : > { %564 = vst.msk [vmem:[#allocation2] sm:$0xff] %vm275_vm0, %v552_v2  ;;  %565 = vst.msk [vmem:[#allocation2 + $0x8] sm:$0xff] %vm275_vm0, %v553_v37  ;;  %v560_v0 = vadd.f32 %v1866_v9, %v512_v55  ;;  %v513_v32 = vld [vmem:[#allocation2 + $0x48] sm:$0xff]  ;;  %v514_v1 = vld [vmem:[#allocation2 + $0x50] sm:$0xff]  ;;  %v2126_v37 = vmul.f32 %v1594_v21, %v1590_v43  ;;  %v2158_v53 = vmul.f32 %v1600_v4, %v1597_v19 }
  0x4a   : > { %566 = vst.msk [vmem:[#allocation2 + $0x10] sm:$0xff] %vm275_vm0, %v554_v3  ;;  %v515_v54 = vld [vmem:[#allocation2 + $0x58] sm:$0xff]  ;;  %567 = vst.msk [vmem:[#allocation2 + $0x18] sm:$0xff] %vm275_vm0, %v555_v42  ;;  %v561_v6 = vadd.f32 %v1868_v10, %v513_v32  ;;  %v562_v7 = vadd.f32 %v1870_v11, %v514_v1  ;;  %v1601_v30 = vld [vmem:[%s1724_s17 + $0x2b] ss:$0 sm:$0xff]  ;;  %v2132_v42 = vmul.f32 %v1594_v21, %v1591_v16 }
  0x4b   : > { %568 = vst.msk [vmem:[#allocation2 + $0x20] sm:$0xff] %vm275_vm0, %v556_v28  ;;  %569 = vst.msk [vmem:[#allocation2 + $0x28] sm:$0xff] %vm275_vm0, %v557_v45  ;;  %v563_v9 = vadd.f32 %v1872_v12, %v515_v54  ;;  %v2135_v10 = vmul.f32 %v1595_v29, %v2055_v5  ;;  %v2137_v11 = vmul.f32 %v1595_v29, %v1590_v43  ;;  %v1602_v3 = vld [vmem:[%s1724_s17 + $0x3b] ss:$0 sm:$0xff]  ;;  %v1606_v28 = vld [vmem:[%s1724_s17 + $0xc] ss:$0 sm:$0xff] }
  0x4c   : > { %2620 = vst [vmem:[#allocation38_spill] sm:$0xff] %v2126_v37  ;;  %570 = vst.msk [vmem:[#allocation2 + $0x30] sm:$0xff] %vm275_vm0, %v558_v50  ;;  %v2139_v12 = vmul.f32 %v1595_v29, %v1591_v16  ;;  %v1603_v2 = vld [vmem:[%s1729_s20 + $0x120] sm:$0xff]  ;;  %v2147_v21 = vmul.f32 %v1599_v20, %v1596_v13  ;;  %v2149_v45 = vmul.f32 %v1599_v20, %v1597_v19  ;;  %v1604_v16 = vld [vmem:[%s1729_s20 + $0x128] sm:$0xff] }
  0x4d   : > { %571 = vst.msk [vmem:[#allocation2 + $0x38] sm:$0xff] %vm275_vm0, %v559_v51  ;;  %572 = vst.msk [vmem:[#allocation2 + $0x40] sm:$0xff] %vm275_vm0, %v560_v0  ;;  %v2151_v5 = vmul.f32 %v1599_v20, %v1598_v57  ;;  %v2153_v43 = vmul.f32 %v1600_v4, %v1596_v13  ;;  %v1605_v29 = vld [vmem:[%s1729_s20 + $0x130] sm:$0xff]  ;;  %v1607_v25 = vld [vmem:[%s1724_s17 + $0x1c] ss:$0 sm:$0xff]  ;;  %v2160_v55 = vmul.f32 %v1600_v4, %v1598_v57 }
  0x4e   : > { %2621 = vst [vmem:[#allocation39_spill] sm:$0xff] %v2132_v42  ;;  %2622 = vst [vmem:[#allocation40_spill] sm:$0xff] %v2135_v10  ;;  %v2162_v50 = vmul.f32 %v1601_v30, %v1596_v13  ;;  %v2164_v51 = vmul.f32 %v1601_v30, %v1597_v19  ;;  %v1608_v0 = vld [vmem:[%s1724_s17 + $0x2c] ss:$0 sm:$0xff]  ;;  %v2167_v32 = vmul.f32 %v1601_v30, %v1598_v57  ;;  %v1609_v30 = vld [vmem:[%s1724_s17 + $0x3c] ss:$0 sm:$0xff] }
  0x4f   : > { %2623 = vst [vmem:[#allocation41_spill] sm:$0xff] %v2137_v11  ;;  %2624 = vst [vmem:[#allocation42_spill] sm:$0xff] %v2139_v12  ;;  %v2169_v20 = vmul.f32 %v1602_v3, %v1596_v13  ;;  %v2171_v1 = vmul.f32 %v1602_v3, %v1597_v19  ;;  %v2173_v54 = vmul.f32 %v1602_v3, %v1598_v57  ;;  %v2649_v12 = vld [vmem:[#allocation7_spill] sm:$0xff] }
  0x50   : > { %573 = vst.msk [vmem:[#allocation2 + $0x48] sm:$0xff] %vm275_vm0, %v561_v6  ;;  %574 = vst.msk [vmem:[#allocation2 + $0x50] sm:$0xff] %vm275_vm0, %v562_v7  ;;  %v2175_v6 = vmul.f32 %v1606_v28, %v1603_v2  ;;  %v2177_v4 = vmul.f32 %v1606_v28, %v1604_v16  ;;  %v2179_v7 = vmul.f32 %v1606_v28, %v1605_v29  ;;  %v577_v13 = vld [vmem:[#allocation2 + $0x8] sm:$0xff] }
  0x51   : > { %575 = vst.msk [vmem:[#allocation2 + $0x58] sm:$0xff] %vm275_vm0, %v563_v9  ;;  %2625 = vst [vmem:[#allocation43_spill] sm:$0xff] %v2147_v21  ;;  %v2181_v9 = vmul.f32 %v1607_v25, %v1603_v2  ;;  %v2186_v19 = vmul.f32 %v1607_v25, %v1605_v29  ;;  %v2188_v57 = vmul.f32 %v1608_v0, %v1603_v2  ;;  %v1612_v28 = vld [vmem:[%s1729_s20 + $0x148] sm:$0xff] }
  0x52   : > { %2626 = vst [vmem:[#allocation44_spill] sm:$0xff] %v2149_v45  ;;  %2627 = vst [vmem:[#allocation45_spill] sm:$0xff] %v2151_v5  ;;  %v2190_v3 = vmul.f32 %v1608_v0, %v1604_v16  ;;  %v581_v5 = vld [vmem:[#allocation2 + $0x28] sm:$0xff] }
  0x53   : > { %2628 = vst [vmem:[#allocation46_spill] sm:$0xff] %v2153_v43  ;;  %2629 = vst [vmem:[#allocation47_spill] sm:$0xff] %v2158_v53  ;;  %v579_v43 = vld [vmem:[#allocation2 + $0x18] sm:$0xff]  ;;  %v629_v11 = vadd.f32 %v2649_v12, %v581_v5  ;;  %v582_v10 = vld [vmem:[#allocation2 + $0x30] sm:$0xff] }
  0x54   : > { %2630 = vst [vmem:[#allocation48_spill] sm:$0xff] %v2160_v55  ;;  %2631 = vst [vmem:[#allocation49_spill] sm:$0xff] %v2162_v50  ;;  %v2646_v55 = vld [vmem:[#allocation4_spill] sm:$0xff]  ;;  %v583_v42 = vld [vmem:[#allocation2 + $0x38] sm:$0xff] }
  0x55   : > { %2632 = vst [vmem:[#allocation50_spill] sm:$0xff] %v2164_v51  ;;  %2633 = vst [vmem:[#allocation51_spill] sm:$0xff] %v2167_v32  ;;  %v576_v32 = vld [vmem:[#allocation2] sm:$0xff]  ;;  %v2184_v51 = vmul.f32 %v1607_v25, %v1604_v16  ;;  %v2200_v25 = vmul.f32 %v1608_v0, %v1605_v29 }
  0x56   : > { %2634 = vst [vmem:[#allocation52_spill] sm:$0xff] %v2169_v20  ;;  %2635 = vst [vmem:[#allocation53_spill] sm:$0xff] %v2171_v1  ;;  %v578_v20 = vld [vmem:[#allocation2 + $0x10] sm:$0xff]  ;;  %v2645_v1 = vld [vmem:[#allocation3_spill] sm:$0xff] }
  0x57   : > { %2636 = vst [vmem:[#allocation54_spill] sm:$0xff] %v2173_v54  ;;  %2637 = vst [vmem:[#allocation55_spill] sm:$0xff] %v2175_v6  ;;  %v1613_v6 = vld [vmem:[%s1724_s17 + $0xd] ss:$0 sm:$0xff]  ;;  %v1610_v54 = vld [vmem:[%s1729_s20 + $0x138] sm:$0xff]  ;;  %v625_v50 = vadd.f32 %v2645_v1, %v577_v13  ;;  %v626_v53 = vadd.f32 %v2646_v55, %v578_v20 }
  0x58   : > { %2638 = vst [vmem:[#allocation56_spill] sm:$0xff] %v2177_v4  ;;  %2639 = vst [vmem:[#allocation57_spill] sm:$0xff] %v2179_v7  ;;  %v1611_v4 = vld [vmem:[%s1729_s20 + $0x140] sm:$0xff]  ;;  %v1614_v7 = vld [vmem:[%s1724_s17 + $0x1d] ss:$0 sm:$0xff] }
  0x59   : > { %2640 = vst [vmem:[#allocation58_spill] sm:$0xff] %v2181_v9  ;;  %2641 = vst [vmem:[#allocation59_spill] sm:$0xff] %v2184_v51  ;;  %v624_v9 = vadd.f32 %v1874_v14, %v576_v32  ;;  %v580_v51 = vld [vmem:[#allocation2 + $0x20] sm:$0xff]  ;;  %v2206_v14 = vmul.f32 %v1609_v30, %v1603_v2  ;;  %v2650_v55 = vld [vmem:[#allocation8_spill] sm:$0xff]  ;;  %v2214_v2 = vmul.f32 %v1609_v30, %v1604_v16 }
  0x5a   : > { %2642 = vst [vmem:[#allocation60_spill] sm:$0xff] %v2186_v19  ;;  %2643 = vst [vmem:[#allocation61_spill] sm:$0xff] %v2188_v57  ;;  %v1615_v19 = vld [vmem:[%s1724_s17 + $0x2d] ss:$0 sm:$0xff]  ;;  %v2647_v57 = vld [vmem:[#allocation5_spill] sm:$0xff]  ;;  %v630_v0 = vadd.f32 %v2650_v55, %v582_v10  ;;  %v2244_v1 = vmul.f32 %v1614_v7, %v1611_v4 }
  0x5b   : > { %2644 = vst [vmem:[#allocation62_spill] sm:$0xff] %v2190_v3  ;;  %v627_v45 = vadd.f32 %v2647_v57, %v579_v43  ;;  %v2648_v3 = vld [vmem:[#allocation6_spill] sm:$0xff]  ;;  %v584_v37 = vld [vmem:[#allocation2 + $0x40] sm:$0xff]  ;;  %636 = vst.msk [vmem:[#allocation2] sm:$0xff] %vm275_vm0, %v624_v9  ;;  %v2246_v9 = vmul.f32 %v1614_v7, %v1612_v28  ;;  %v2253_v57 = vmul.f32 %v1615_v19, %v1612_v28 }
  0x5c   : > { %v628_v21 = vadd.f32 %v2648_v3, %v580_v51  ;;  %637 = vst.msk [vmem:[#allocation2 + $0x8] sm:$0xff] %vm275_vm0, %v625_v50  ;;  %638 = vst.msk [vmem:[#allocation2 + $0x10] sm:$0xff] %vm275_vm0, %v626_v53  ;;  %v2651_v43 = vld [vmem:[#allocation9_spill] sm:$0xff]  ;;  %v632_v12 = vadd.f32 %v1899_v63, %v584_v37  ;;  %v585_v5 = vld [vmem:[#allocation2 + $0x48] sm:$0xff]  ;;  %v2222_v37 = vmul.f32 %v1609_v30, %v1605_v29 }
  0x5d   : > { %v631_v51 = vadd.f32 %v2651_v43, %v583_v42  ;;  %v586_v32 = vld [vmem:[#allocation2 + $0x50] sm:$0xff]  ;;  %v587_v20 = vld [vmem:[#allocation2 + $0x58] sm:$0xff]  ;;  %639 = vst.msk [vmem:[#allocation2 + $0x18] sm:$0xff] %vm275_vm0, %v627_v45  ;;  %641 = vst.msk [vmem:[#allocation2 + $0x28] sm:$0xff] %vm275_vm0, %v629_v11  ;;  %v633_v10 = vadd.f32 %v1905_v47, %v585_v5  ;;  %v2230_v11 = vmul.f32 %v1613_v6, %v1610_v54 }
  0x5e   : > { %640 = vst.msk [vmem:[#allocation2 + $0x20] sm:$0xff] %vm275_vm0, %v628_v21  ;;  %v634_v42 = vadd.f32 %v1913_v44, %v586_v32  ;;  %v635_v63 = vadd.f32 %v1921_v18, %v587_v20  ;;  %v1616_v53 = vld [vmem:[%s1724_s17 + $0x3d] ss:$0 sm:$0xff]  ;;  %v1620_v16 = vld [vmem:[%s1724_s17 + $0xe] ss:$0 sm:$0xff]  ;;  %v1617_v50 = vld [vmem:[%s1729_s20 + $0x150] sm:$0xff]  ;;  %v2232_v47 = vmul.f32 %v1613_v6, %v1611_v4  ;;  %v2234_v21 = vmul.f32 %v1613_v6, %v1612_v28 }
  0x5f   : > { %642 = vst.msk [vmem:[#allocation2 + $0x30] sm:$0xff] %vm275_vm0, %v630_v0  ;;  %643 = vst.msk [vmem:[#allocation2 + $0x38] sm:$0xff] %vm275_vm0, %v631_v51  ;;  %v2236_v44 = vmul.f32 %v1614_v7, %v1610_v54  ;;  %v1618_v18 = vld [vmem:[%s1729_s20 + $0x158] sm:$0xff]  ;;  %v1619_v45 = vld [vmem:[%s1729_s20 + $0x160] sm:$0xff]  ;;  %v2248_v6 = vmul.f32 %v1615_v19, %v1610_v54  ;;  %v2250_v30 = vmul.f32 %v1615_v19, %v1611_v4 }
  0x60   : > { %644 = vst.msk [vmem:[#allocation2 + $0x40] sm:$0xff] %vm275_vm0, %v632_v12  ;;  %v1621_v29 = vld [vmem:[%s1724_s17 + $0x1e] ss:$0 sm:$0xff]  ;;  %645 = vst.msk [vmem:[#allocation2 + $0x48] sm:$0xff] %vm275_vm0, %v633_v10  ;;  %v1622_v13 = vld [vmem:[%s1724_s17 + $0x2e] ss:$0 sm:$0xff]  ;;  %v2255_v3 = vmul.f32 %v1616_v53, %v1610_v54  ;;  %v2257_v55 = vmul.f32 %v1616_v53, %v1611_v4  ;;  %v2259_v0 = vmul.f32 %v1616_v53, %v1612_v28 }
  0x61   : > { %646 = vst.msk [vmem:[#allocation2 + $0x50] sm:$0xff] %vm275_vm0, %v634_v42  ;;  %647 = vst.msk [vmem:[#allocation2 + $0x58] sm:$0xff] %vm275_vm0, %v635_v63  ;;  %v1623_v43 = vld [vmem:[%s1724_s17 + $0x3e] ss:$0 sm:$0xff]  ;;  %v2262_v51 = vmul.f32 %v1620_v16, %v1617_v50  ;;  %v2264_v7 = vmul.f32 %v1620_v16, %v1618_v18  ;;  %v2266_v12 = vmul.f32 %v1620_v16, %v1619_v45  ;;  %v1627_v32 = vld [vmem:[%s1724_s17 + $0xf] ss:$0 sm:$0xff] }
  0x62   : > { %2652 = vst [vmem:[#allocation3_spill] sm:$0xff] %v2253_v57  ;;  %2653 = vst [vmem:[#allocation4_spill] sm:$0xff] %v2255_v3  ;;  %v2268_v5 = vmul.f32 %v1621_v29, %v1617_v50  ;;  %v1624_v19 = vld [vmem:[%s1729_s20 + $0x168] sm:$0xff]  ;;  %v2272_v20 = vmul.f32 %v1621_v29, %v1618_v18  ;;  %v2274_v54 = vmul.f32 %v1621_v29, %v1619_v45  ;;  %v1625_v10 = vld [vmem:[%s1729_s20 + $0x170] sm:$0xff] }
  0x63   : > { %2654 = vst [vmem:[#allocation5_spill] sm:$0xff] %v2257_v55  ;;  %2655 = vst [vmem:[#allocation6_spill] sm:$0xff] %v2259_v0  ;;  %v2276_v4 = vmul.f32 %v1622_v13, %v1617_v50  ;;  %v2278_v28 = vmul.f32 %v1622_v13, %v1618_v18  ;;  %v1626_v42 = vld [vmem:[%s1729_s20 + $0x178] sm:$0xff]  ;;  %v648_v53 = vld [vmem:[#allocation2] sm:$0xff]  ;;  %v2295_v57 = vmul.f32 %v1627_v32, %v1624_v19 }
  0x64   : > { %2656 = vst [vmem:[#allocation7_spill] sm:$0xff] %v2262_v51  ;;  %2657 = vst [vmem:[#allocation8_spill] sm:$0xff] %v2264_v7  ;;  %v1628_v63 = vld [vmem:[%s1724_s17 + $0x1f] ss:$0 sm:$0xff]  ;;  %v649_v16 = vld [vmem:[#allocation2 + $0x8] sm:$0xff]  ;;  %v2283_v7 = vmul.f32 %v1622_v13, %v1619_v45  ;;  %v2287_v51 = vmul.f32 %v1623_v43, %v1618_v18 }
  0x65   : > { %2658 = vst [vmem:[#allocation9_spill] sm:$0xff] %v2266_v12  ;;  %2659 = vst [vmem:[#allocation63_spill] sm:$0xff] %v2268_v5  ;;  %v650_v12 = vld [vmem:[#allocation2 + $0x10] sm:$0xff]  ;;  %v2285_v5 = vmul.f32 %v1623_v43, %v1617_v50  ;;  %v1629_v29 = vld [vmem:[%s1724_s17 + $0x2f] ss:$0 sm:$0xff] }
  0x66   : > { %2660 = vst [vmem:[#allocation64_spill] sm:$0xff] %v2272_v20  ;;  %2661 = vst [vmem:[#allocation65_spill] sm:$0xff] %v2274_v54  ;;  %v2289_v20 = vmul.f32 %v1623_v43, %v1619_v45  ;;  %v698_v54 = vadd.f32 %v1933_v15, %v650_v12  ;;  %v651_v0 = vld [vmem:[#allocation2 + $0x18] sm:$0xff]  ;;  %v652_v55 = vld [vmem:[#allocation2 + $0x20] sm:$0xff] }
  0x67   : > { %2662 = vst [vmem:[#allocation66_spill] sm:$0xff] %v2276_v4  ;;  %2663 = vst [vmem:[#allocation67_spill] sm:$0xff] %v2278_v28  ;;  %v696_v4 = vadd.f32 %v1929_v22, %v648_v53  ;;  %v697_v28 = vadd.f32 %v1931_v59, %v649_v16  ;;  %v653_v3 = vld [vmem:[#allocation2 + $0x28] sm:$0xff]  ;;  %v1630_v13 = vld [vmem:[%s1724_s17 + $0x3f] ss:$0 sm:$0xff]  ;;  %v699_v50 = vadd.f32 %v1935_v60, %v651_v0 }
  0x68   : > { %2664 = vst [vmem:[#allocation68_spill] sm:$0xff] %v2287_v51  ;;  %2665 = vst [vmem:[#allocation69_spill] sm:$0xff] %v2289_v20  ;;  %v700_v18 = vadd.f32 %v1943_v23, %v652_v55  ;;  %v701_v45 = vadd.f32 %v1945_v24, %v653_v3  ;;  %v654_v43 = vld [vmem:[#allocation2 + $0x30] sm:$0xff]  ;;  %v655_v20 = vld [vmem:[#allocation2 + $0x38] sm:$0xff]  ;;  %v2301_v22 = vmul.f32 %v1627_v32, %v1625_v10 }
  0x69   : > { %v656_v51 = vld [vmem:[#allocation2 + $0x40] sm:$0xff]  ;;  %708 = vst.msk [vmem:[#allocation2] sm:$0xff] %vm275_vm0, %v696_v4  ;;  %709 = vst.msk [vmem:[#allocation2 + $0x8] sm:$0xff] %vm275_vm0, %v697_v28  ;;  %v702_v59 = vadd.f32 %v1947_v17, %v654_v43  ;;  %v703_v15 = vadd.f32 %v1949_v26, %v655_v20  ;;  %v657_v23 = vld [vmem:[#allocation2 + $0x48] sm:$0xff]  ;;  %v2309_v3 = vmul.f32 %v1627_v32, %v1626_v42 }
  0x6a   : > { %710 = vst.msk [vmem:[#allocation2 + $0x10] sm:$0xff] %vm275_vm0, %v698_v54  ;;  %v704_v60 = vadd.f32 %v1952_v33, %v656_v51  ;;  %v658_v55 = vld [vmem:[#allocation2 + $0x50] sm:$0xff]  ;;  %v659_v24 = vld [vmem:[#allocation2 + $0x58] sm:$0xff]  ;;  %711 = vst.msk [vmem:[#allocation2 + $0x18] sm:$0xff] %vm275_vm0, %v699_v50  ;;  %v705_v0 = vadd.f32 %v1954_v34, %v657_v23  ;;  %v2317_v26 = vmul.f32 %v1628_v63, %v1624_v19 }
  0x6b   : > { %712 = vst.msk [vmem:[#allocation2 + $0x20] sm:$0xff] %vm275_vm0, %v700_v18  ;;  %713 = vst.msk [vmem:[#allocation2 + $0x28] sm:$0xff] %vm275_vm0, %v701_v45  ;;  %v706_v12 = vadd.f32 %v1956_v35, %v658_v55  ;;  %v2666_v17 = vld [vmem:[#allocation10_spill] sm:$0xff]  ;;  %v2322_v33 = vmul.f32 %v1628_v63, %v1625_v10  ;;  %v2324_v51 = vmul.f32 %v1628_v63, %v1626_v42  ;;  %v2667_v50 = vld [vmem:[#allocation11_spill] sm:$0xff] }
  0x6c   : > { %v707_v54 = vadd.f32 %v2666_v17, %v659_v24  ;;  %714 = vst.msk [vmem:[#allocation2 + $0x30] sm:$0xff] %vm275_vm0, %v702_v59  ;;  %715 = vst.msk [vmem:[#allocation2 + $0x38] sm:$0xff] %vm275_vm0, %v703_v15  ;;  %v2326_v32 = vmul.f32 %v1629_v29, %v1624_v19  ;;  %v2328_v20 = vmul.f32 %v1629_v29, %v1625_v10  ;;  %v2668_v45 = vld [vmem:[#allocation12_spill] sm:$0xff]  ;;  %v2669_v59 = vld [vmem:[#allocation13_spill] sm:$0xff] }
  0x6d   : > { %716 = vst.msk [vmem:[#allocation2 + $0x40] sm:$0xff] %vm275_vm0, %v704_v60  ;;  %717 = vst.msk [vmem:[#allocation2 + $0x48] sm:$0xff] %vm275_vm0, %v705_v0  ;;  %v2333_v34 = vmul.f32 %v1629_v29, %v1626_v42  ;;  %v2335_v35 = vmul.f32 %v1630_v13, %v1624_v19  ;;  %v2337_v4 = vmul.f32 %v1630_v13, %v1625_v10  ;;  %v2670_v29 = vld [vmem:[#allocation14_spill] sm:$0xff]  ;;  %v2671_v19 = vld [vmem:[#allocation15_spill] sm:$0xff] }
  0x6e   : > { %718 = vst.msk [vmem:[#allocation2 + $0x50] sm:$0xff] %vm275_vm0, %v706_v12  ;;  %719 = vst.msk [vmem:[#allocation2 + $0x58] sm:$0xff] %vm275_vm0, %v707_v54  ;;  %v2339_v28 = vmul.f32 %v1630_v13, %v1626_v42  ;;  %v2672_v10 = vld [vmem:[#allocation16_spill] sm:$0xff]  ;;  %v2673_v54 = vld [vmem:[#allocation17_spill] sm:$0xff] }
  0x70   : > { %v720_v63 = vld [vmem:[#allocation2] sm:$0xff]  ;;  %v721_v53 = vld [vmem:[#allocation2 + $0x8] sm:$0xff] }
  0x71   : > { %v722_v16 = vld [vmem:[#allocation2 + $0x10] sm:$0xff]  ;;  %v768_v18 = vadd.f32 %v2667_v50, %v720_v63  ;;  %v769_v43 = vadd.f32 %v2668_v45, %v721_v53  ;;  %v723_v60 = vld [vmem:[#allocation2 + $0x18] sm:$0xff] }
  0x72   : > { %v770_v15 = vadd.f32 %v2669_v59, %v722_v16  ;;  %v724_v23 = vld [vmem:[#allocation2 + $0x20] sm:$0xff]  ;;  %v725_v55 = vld [vmem:[#allocation2 + $0x28] sm:$0xff]  ;;  %v771_v24 = vadd.f32 %v2670_v29, %v723_v60  ;;  %v2674_v53 = vld [vmem:[#allocation18_spill] sm:$0xff] }
  0x73   : > { %v772_v0 = vadd.f32 %v2671_v19, %v724_v23  ;;  %v773_v12 = vadd.f32 %v2672_v10, %v725_v55  ;;  %v726_v42 = vld [vmem:[#allocation2 + $0x30] sm:$0xff]  ;;  %v727_v13 = vld [vmem:[#allocation2 + $0x38] sm:$0xff]  ;;  %780 = vst.msk [vmem:[#allocation2] sm:$0xff] %vm275_vm0, %v768_v18  ;;  %781 = vst.msk [vmem:[#allocation2 + $0x8] sm:$0xff] %vm275_vm0, %v769_v43 }
  0x74   : > { %v728_v17 = vld [vmem:[#allocation2 + $0x40] sm:$0xff]  ;;  %782 = vst.msk [vmem:[#allocation2 + $0x10] sm:$0xff] %vm275_vm0, %v770_v15  ;;  %v774_v63 = vadd.f32 %v2673_v54, %v726_v42  ;;  %v775_v16 = vadd.f32 %v2674_v53, %v727_v13  ;;  %v729_v45 = vld [vmem:[#allocation2 + $0x48] sm:$0xff]  ;;  %783 = vst.msk [vmem:[#allocation2 + $0x18] sm:$0xff] %vm275_vm0, %v771_v24 }
  0x75   : > { %v776_v50 = vadd.f32 %v1984_v52, %v728_v17  ;;  %v730_v59 = vld [vmem:[#allocation2 + $0x50] sm:$0xff]  ;;  %v731_v60 = vld [vmem:[#allocation2 + $0x58] sm:$0xff]  ;;  %784 = vst.msk [vmem:[#allocation2 + $0x20] sm:$0xff] %vm275_vm0, %v772_v0  ;;  %785 = vst.msk [vmem:[#allocation2 + $0x28] sm:$0xff] %vm275_vm0, %v773_v12  ;;  %v777_v18 = vadd.f32 %v1986_v49, %v729_v45 }
  0x76   : > { %v2675_v43 = vld [vmem:[#allocation19_spill] sm:$0xff]  ;;  %v2676_v15 = vld [vmem:[#allocation20_spill] sm:$0xff]  ;;  %786 = vst.msk [vmem:[#allocation2 + $0x30] sm:$0xff] %vm275_vm0, %v774_v63  ;;  %787 = vst.msk [vmem:[#allocation2 + $0x38] sm:$0xff] %vm275_vm0, %v775_v16 }
  0x77   : > { %v778_v23 = vadd.f32 %v2675_v43, %v730_v59  ;;  %v779_v55 = vadd.f32 %v2676_v15, %v731_v60  ;;  %788 = vst.msk [vmem:[#allocation2 + $0x40] sm:$0xff] %vm275_vm0, %v776_v50  ;;  %789 = vst.msk [vmem:[#allocation2 + $0x48] sm:$0xff] %vm275_vm0, %v777_v18  ;;  %v2677_v59 = vld [vmem:[#allocation21_spill] sm:$0xff] }
  0x79   : > { %790 = vst.msk [vmem:[#allocation2 + $0x50] sm:$0xff] %vm275_vm0, %v778_v23  ;;  %791 = vst.msk [vmem:[#allocation2 + $0x58] sm:$0xff] %vm275_vm0, %v779_v55  ;;  %v2680_v23 = vld [vmem:[#allocation24_spill] sm:$0xff] }
  0x7a   : > { %v792_v52 = vld [vmem:[#allocation2] sm:$0xff]  ;;  %v793_v29 = vld [vmem:[#allocation2 + $0x8] sm:$0xff] }
  0x7b   : > { %v794_v24 = vld [vmem:[#allocation2 + $0x10] sm:$0xff]  ;;  %v840_v49 = vadd.f32 %v1997_v27, %v792_v52  ;;  %v841_v19 = vadd.f32 %v2003_v48, %v793_v29  ;;  %v795_v10 = vld [vmem:[#allocation2 + $0x18] sm:$0xff] }
  0x7c   : > { %v842_v0 = vadd.f32 %v2013_v58, %v794_v24  ;;  %v796_v12 = vld [vmem:[#allocation2 + $0x20] sm:$0xff]  ;;  %v797_v42 = vld [vmem:[#allocation2 + $0x28] sm:$0xff]  ;;  %v843_v13 = vadd.f32 %v2022_v38, %v795_v10  ;;  %v2681_v24 = vld [vmem:[#allocation25_spill] sm:$0xff] }
  0x7d   : > { %v844_v17 = vadd.f32 %v2030_v39, %v796_v12  ;;  %v845_v54 = vadd.f32 %v2032_v40, %v797_v42  ;;  %v798_v63 = vld [vmem:[#allocation2 + $0x30] sm:$0xff]  ;;  %v799_v53 = vld [vmem:[#allocation2 + $0x38] sm:$0xff]  ;;  %852 = vst.msk [vmem:[#allocation2] sm:$0xff] %vm275_vm0, %v840_v49  ;;  %853 = vst.msk [vmem:[#allocation2 + $0x8] sm:$0xff] %vm275_vm0, %v841_v19 }
  0x7e   : > { %v800_v16 = vld [vmem:[#allocation2 + $0x40] sm:$0xff]  ;;  %854 = vst.msk [vmem:[#allocation2 + $0x10] sm:$0xff] %vm275_vm0, %v842_v0  ;;  %v846_v48 = vadd.f32 %v2035_v41, %v798_v63  ;;  %v847_v27 = vadd.f32 %v2037_v31, %v799_v53  ;;  %v801_v38 = vld [vmem:[#allocation2 + $0x48] sm:$0xff]  ;;  %855 = vst.msk [vmem:[#allocation2 + $0x18] sm:$0xff] %vm275_vm0, %v843_v13 }
  0x7f   : > { %v848_v58 = vadd.f32 %v2043_v61, %v800_v16  ;;  %856 = vst.msk [vmem:[#allocation2 + $0x20] sm:$0xff] %vm275_vm0, %v844_v17  ;;  %857 = vst.msk [vmem:[#allocation2 + $0x28] sm:$0xff] %vm275_vm0, %v845_v54  ;;  %v849_v40 = vadd.f32 %v2046_v56, %v801_v38  ;;  %v2678_v56 = vld [vmem:[#allocation22_spill] sm:$0xff]  ;;  %v2683_v10 = vld [vmem:[#allocation27_spill] sm:$0xff] }
  0x80   : > { %v802_v50 = vld [vmem:[#allocation2 + $0x50] sm:$0xff]  ;;  %v803_v39 = vld [vmem:[#allocation2 + $0x58] sm:$0xff]  ;;  %858 = vst.msk [vmem:[#allocation2 + $0x30] sm:$0xff] %vm275_vm0, %v846_v48  ;;  %859 = vst.msk [vmem:[#allocation2 + $0x38] sm:$0xff] %vm275_vm0, %v847_v27 }
  0x81   : > { %v850_v45 = vadd.f32 %v2048_v62, %v802_v50  ;;  %v851_v60 = vadd.f32 %v2677_v59, %v803_v39  ;;  %860 = vst.msk [vmem:[#allocation2 + $0x40] sm:$0xff] %vm275_vm0, %v848_v58  ;;  %861 = vst.msk [vmem:[#allocation2 + $0x48] sm:$0xff] %vm275_vm0, %v849_v40  ;;  %v2679_v62 = vld [vmem:[#allocation23_spill] sm:$0xff]  ;;  %v2682_v19 = vld [vmem:[#allocation26_spill] sm:$0xff] }
  0x82   : > { %v2684_v54 = vld [vmem:[#allocation28_spill] sm:$0xff]  ;;  %v2685_v53 = vld [vmem:[#allocation29_spill] sm:$0xff]  ;;  %v2686_v48 = vld [vmem:[#allocation30_spill] sm:$0xff] }
  0x83   : > { %862 = vst.msk [vmem:[#allocation2 + $0x50] sm:$0xff] %vm275_vm0, %v850_v45  ;;  %863 = vst.msk [vmem:[#allocation2 + $0x58] sm:$0xff] %vm275_vm0, %v851_v60  ;;  %v2687_v39 = vld [vmem:[#allocation31_spill] sm:$0xff]  ;;  %v2688_v45 = vld [vmem:[#allocation32_spill] sm:$0xff] }
  0x84   : > { %v864_v41 = vld [vmem:[#allocation2] sm:$0xff]  ;;  %v865_v31 = vld [vmem:[#allocation2 + $0x8] sm:$0xff]  ;;  %v2689_v60 = vld [vmem:[#allocation33_spill] sm:$0xff] }
  0x85   : > { %v866_v61 = vld [vmem:[#allocation2 + $0x10] sm:$0xff]  ;;  %v912_v18 = vadd.f32 %v2678_v56, %v864_v41  ;;  %v913_v43 = vadd.f32 %v2679_v62, %v865_v31  ;;  %v867_v55 = vld [vmem:[#allocation2 + $0x18] sm:$0xff] }
  0x86   : > { %v914_v15 = vadd.f32 %v2680_v23, %v866_v61  ;;  %v868_v52 = vld [vmem:[#allocation2 + $0x20] sm:$0xff]  ;;  %v869_v29 = vld [vmem:[#allocation2 + $0x28] sm:$0xff]  ;;  %v915_v49 = vadd.f32 %v2681_v24, %v867_v55 }
  0x87   : > { %v916_v0 = vadd.f32 %v2682_v19, %v868_v52  ;;  %v917_v12 = vadd.f32 %v2683_v10, %v869_v29  ;;  %v870_v42 = vld [vmem:[#allocation2 + $0x30] sm:$0xff]  ;;  %v871_v13 = vld [vmem:[#allocation2 + $0x38] sm:$0xff]  ;;  %924 = vst.msk [vmem:[#allocation2] sm:$0xff] %vm275_vm0, %v912_v18  ;;  %925 = vst.msk [vmem:[#allocation2 + $0x8] sm:$0xff] %vm275_vm0, %v913_v43 }
  0x88   : > { %v872_v17 = vld [vmem:[#allocation2 + $0x40] sm:$0xff]  ;;  %926 = vst.msk [vmem:[#allocation2 + $0x10] sm:$0xff] %vm275_vm0, %v914_v15  ;;  %v918_v63 = vadd.f32 %v2684_v54, %v870_v42  ;;  %v919_v16 = vadd.f32 %v2685_v53, %v871_v13  ;;  %v873_v58 = vld [vmem:[#allocation2 + $0x48] sm:$0xff]  ;;  %927 = vst.msk [vmem:[#allocation2 + $0x18] sm:$0xff] %vm275_vm0, %v915_v49 }
  0x89   : > { %v920_v27 = vadd.f32 %v2686_v48, %v872_v17  ;;  %928 = vst.msk [vmem:[#allocation2 + $0x20] sm:$0xff] %vm275_vm0, %v916_v0  ;;  %929 = vst.msk [vmem:[#allocation2 + $0x28] sm:$0xff] %vm275_vm0, %v917_v12  ;;  %v921_v40 = vadd.f32 %v2687_v39, %v873_v58  ;;  %v2690_v18 = vld [vmem:[#allocation34_spill] sm:$0xff]  ;;  %v2691_v43 = vld [vmem:[#allocation35_spill] sm:$0xff] }
  0x8a   : > { %v874_v38 = vld [vmem:[#allocation2 + $0x50] sm:$0xff]  ;;  %v875_v50 = vld [vmem:[#allocation2 + $0x58] sm:$0xff]  ;;  %930 = vst.msk [vmem:[#allocation2 + $0x30] sm:$0xff] %vm275_vm0, %v918_v63  ;;  %931 = vst.msk [vmem:[#allocation2 + $0x38] sm:$0xff] %vm275_vm0, %v919_v16 }
  0x8b   : > { %v922_v59 = vadd.f32 %v2688_v45, %v874_v38  ;;  %v923_v41 = vadd.f32 %v2689_v60, %v875_v50  ;;  %932 = vst.msk [vmem:[#allocation2 + $0x40] sm:$0xff] %vm275_vm0, %v920_v27  ;;  %933 = vst.msk [vmem:[#allocation2 + $0x48] sm:$0xff] %vm275_vm0, %v921_v40  ;;  %v2692_v15 = vld [vmem:[#allocation36_spill] sm:$0xff]  ;;  %v2693_v49 = vld [vmem:[#allocation37_spill] sm:$0xff] }
  0x8c   : > { %v2694_v54 = vld [vmem:[#allocation38_spill] sm:$0xff]  ;;  %v2695_v53 = vld [vmem:[#allocation39_spill] sm:$0xff]  ;;  %v2697_v38 = vld [vmem:[#allocation41_spill] sm:$0xff] }
  0x8d   : > { %934 = vst.msk [vmem:[#allocation2 + $0x50] sm:$0xff] %vm275_vm0, %v922_v59  ;;  %935 = vst.msk [vmem:[#allocation2 + $0x58] sm:$0xff] %vm275_vm0, %v923_v41  ;;  %v2698_v39 = vld [vmem:[#allocation42_spill] sm:$0xff]  ;;  %v2699_v60 = vld [vmem:[#allocation43_spill] sm:$0xff] }
  0x8e   : > { %v936_v31 = vld [vmem:[#allocation2] sm:$0xff]  ;;  %v937_v61 = vld [vmem:[#allocation2 + $0x8] sm:$0xff] }
  0x8f   : > { %v938_v56 = vld [vmem:[#allocation2 + $0x10] sm:$0xff]  ;;  %v984_v62 = vadd.f32 %v2690_v18, %v936_v31  ;;  %v985_v23 = vadd.f32 %v2691_v43, %v937_v61  ;;  %v939_v52 = vld [vmem:[#allocation2 + $0x18] sm:$0xff]  ;;  %v2700_v31 = vld [vmem:[#allocation44_spill] sm:$0xff] }
  0x90   : > { %v986_v55 = vadd.f32 %v2692_v15, %v938_v56  ;;  %v940_v29 = vld [vmem:[#allocation2 + $0x20] sm:$0xff]  ;;  %v941_v24 = vld [vmem:[#allocation2 + $0x28] sm:$0xff]  ;;  %v987_v19 = vadd.f32 %v2693_v49, %v939_v52  ;;  %v2701_v56 = vld [vmem:[#allocation45_spill] sm:$0xff] }
  0x91   : > { %v988_v0 = vadd.f32 %v2099_v8, %v940_v29  ;;  %v989_v10 = vadd.f32 %v2109_v46, %v941_v24  ;;  %v942_v12 = vld [vmem:[#allocation2 + $0x30] sm:$0xff]  ;;  %v943_v42 = vld [vmem:[#allocation2 + $0x38] sm:$0xff]  ;;  %996 = vst.msk [vmem:[#allocation2] sm:$0xff] %vm275_vm0, %v984_v62  ;;  %997 = vst.msk [vmem:[#allocation2 + $0x8] sm:$0xff] %vm275_vm0, %v985_v23 }
  0x92   : > { %v944_v13 = vld [vmem:[#allocation2 + $0x40] sm:$0xff]  ;;  %998 = vst.msk [vmem:[#allocation2 + $0x10] sm:$0xff] %vm275_vm0, %v986_v55  ;;  %v990_v17 = vadd.f32 %v2118_v36, %v942_v12  ;;  %v991_v63 = vadd.f32 %v2694_v54, %v943_v42  ;;  %v945_v48 = vld [vmem:[#allocation2 + $0x48] sm:$0xff]  ;;  %999 = vst.msk [vmem:[#allocation2 + $0x18] sm:$0xff] %vm275_vm0, %v987_v19 }
  0x93   : > { %v992_v16 = vadd.f32 %v2695_v53, %v944_v13  ;;  %1000 = vst.msk [vmem:[#allocation2 + $0x20] sm:$0xff] %vm275_vm0, %v988_v0  ;;  %1001 = vst.msk [vmem:[#allocation2 + $0x28] sm:$0xff] %vm275_vm0, %v989_v10  ;;  %v2696_v46 = vld [vmem:[#allocation40_spill] sm:$0xff]  ;;  %v2702_v15 = vld [vmem:[#allocation46_spill] sm:$0xff] }
  0x94   : > { %v946_v27 = vld [vmem:[#allocation2 + $0x50] sm:$0xff]  ;;  %v947_v8 = vld [vmem:[#allocation2 + $0x58] sm:$0xff]  ;;  %v993_v58 = vadd.f32 %v2696_v46, %v945_v48  ;;  %1002 = vst.msk [vmem:[#allocation2 + $0x30] sm:$0xff] %vm275_vm0, %v990_v17  ;;  %1003 = vst.msk [vmem:[#allocation2 + $0x38] sm:$0xff] %vm275_vm0, %v991_v63 }
  0x95   : > { %v994_v50 = vadd.f32 %v2697_v38, %v946_v27  ;;  %v995_v40 = vadd.f32 %v2698_v39, %v947_v8  ;;  %1004 = vst.msk [vmem:[#allocation2 + $0x40] sm:$0xff] %vm275_vm0, %v992_v16  ;;  %v2703_v52 = vld [vmem:[#allocation47_spill] sm:$0xff]  ;;  %v2704_v24 = vld [vmem:[#allocation48_spill] sm:$0xff]  ;;  %v2705_v12 = vld [vmem:[#allocation49_spill] sm:$0xff] }
  0x96   : > { %1005 = vst.msk [vmem:[#allocation2 + $0x48] sm:$0xff] %vm275_vm0, %v993_v58  ;;  %v2706_v13 = vld [vmem:[#allocation50_spill] sm:$0xff]  ;;  %v2707_v54 = vld [vmem:[#allocation51_spill] sm:$0xff]  ;;  %v2708_v27 = vld [vmem:[#allocation52_spill] sm:$0xff] }
  0x97   : > { %1006 = vst.msk [vmem:[#allocation2 + $0x50] sm:$0xff] %vm275_vm0, %v994_v50  ;;  %1007 = vst.msk [vmem:[#allocation2 + $0x58] sm:$0xff] %vm275_vm0, %v995_v40  ;;  %v2709_v46 = vld [vmem:[#allocation53_spill] sm:$0xff]  ;;  %v2710_v38 = vld [vmem:[#allocation54_spill] sm:$0xff] }
  0x98   : > { %v1008_v36 = vld [vmem:[#allocation2] sm:$0xff]  ;;  %v1009_v45 = vld [vmem:[#allocation2 + $0x8] sm:$0xff] }
  0x99   : > { %v1010_v59 = vld [vmem:[#allocation2 + $0x10] sm:$0xff]  ;;  %v1056_v41 = vadd.f32 %v2699_v60, %v1008_v36  ;;  %v1057_v61 = vadd.f32 %v2700_v31, %v1009_v45  ;;  %v1011_v62 = vld [vmem:[#allocation2 + $0x18] sm:$0xff]  ;;  %v2711_v45 = vld [vmem:[#allocation55_spill] sm:$0xff] }
  0x9a   : > { %v1058_v18 = vadd.f32 %v2701_v56, %v1010_v59  ;;  %v1012_v43 = vld [vmem:[#allocation2 + $0x20] sm:$0xff]  ;;  %v1013_v23 = vld [vmem:[#allocation2 + $0x28] sm:$0xff]  ;;  %v1059_v55 = vadd.f32 %v2702_v15, %v1011_v62  ;;  %v2713_v31 = vld [vmem:[#allocation57_spill] sm:$0xff] }
  0x9b   : > { %v1060_v29 = vadd.f32 %v2703_v52, %v1012_v43  ;;  %v1061_v49 = vadd.f32 %v2704_v24, %v1013_v23  ;;  %v1014_v19 = vld [vmem:[#allocation2 + $0x30] sm:$0xff]  ;;  %v1015_v0 = vld [vmem:[#allocation2 + $0x38] sm:$0xff]  ;;  %1068 = vst.msk [vmem:[#allocation2] sm:$0xff] %vm275_vm0, %v1056_v41  ;;  %1069 = vst.msk [vmem:[#allocation2 + $0x8] sm:$0xff] %vm275_vm0, %v1057_v61 }
  0x9c   : > { %v1016_v10 = vld [vmem:[#allocation2 + $0x40] sm:$0xff]  ;;  %1070 = vst.msk [vmem:[#allocation2 + $0x10] sm:$0xff] %vm275_vm0, %v1058_v18  ;;  %v1062_v42 = vadd.f32 %v2705_v12, %v1014_v19  ;;  %v1063_v17 = vadd.f32 %v2706_v13, %v1015_v0  ;;  %1071 = vst.msk [vmem:[#allocation2 + $0x18] sm:$0xff] %vm275_vm0, %v1059_v55  ;;  %v2712_v60 = vld [vmem:[#allocation56_spill] sm:$0xff] }
  0x9d   : > { %v1064_v63 = vadd.f32 %v2707_v54, %v1016_v10  ;;  %v1017_v53 = vld [vmem:[#allocation2 + $0x48] sm:$0xff]  ;;  %1072 = vst.msk [vmem:[#allocation2 + $0x20] sm:$0xff] %vm275_vm0, %v1060_v29  ;;  %1073 = vst.msk [vmem:[#allocation2 + $0x28] sm:$0xff] %vm275_vm0, %v1061_v49  ;;  %v2714_v43 = vld [vmem:[#allocation58_spill] sm:$0xff] }
  0x9e   : > { %v1018_v16 = vld [vmem:[#allocation2 + $0x50] sm:$0xff]  ;;  %v1019_v48 = vld [vmem:[#allocation2 + $0x58] sm:$0xff]  ;;  %v1065_v8 = vadd.f32 %v2708_v27, %v1017_v53  ;;  %1074 = vst.msk [vmem:[#allocation2 + $0x30] sm:$0xff] %vm275_vm0, %v1062_v42  ;;  %1075 = vst.msk [vmem:[#allocation2 + $0x38] sm:$0xff] %vm275_vm0, %v1063_v17 }
  0x9f   : > { %v1066_v58 = vadd.f32 %v2709_v46, %v1018_v16  ;;  %v1067_v50 = vadd.f32 %v2710_v38, %v1019_v48  ;;  %1076 = vst.msk [vmem:[#allocation2 + $0x40] sm:$0xff] %vm275_vm0, %v1064_v63  ;;  %v2715_v15 = vld [vmem:[#allocation59_spill] sm:$0xff]  ;;  %v2716_v52 = vld [vmem:[#allocation60_spill] sm:$0xff]  ;;  %v2717_v0 = vld [vmem:[#allocation61_spill] sm:$0xff] }
  0xa0   : > { %1077 = vst.msk [vmem:[#allocation2 + $0x48] sm:$0xff] %vm275_vm0, %v1065_v8  ;;  %v2718_v12 = vld [vmem:[#allocation62_spill] sm:$0xff] }
  0xa1   : > { %1078 = vst.msk [vmem:[#allocation2 + $0x50] sm:$0xff] %vm275_vm0, %v1066_v58  ;;  %1079 = vst.msk [vmem:[#allocation2 + $0x58] sm:$0xff] %vm275_vm0, %v1067_v50 }
  0xa2   : > { %v1080_v39 = vld [vmem:[#allocation2] sm:$0xff]  ;;  %v1081_v40 = vld [vmem:[#allocation2 + $0x8] sm:$0xff] }
  0xa3   : > { %v1082_v36 = vld [vmem:[#allocation2 + $0x10] sm:$0xff]  ;;  %v1128_v59 = vadd.f32 %v2711_v45, %v1080_v39  ;;  %v1129_v41 = vadd.f32 %v2712_v60, %v1081_v40  ;;  %v1083_v56 = vld [vmem:[#allocation2 + $0x18] sm:$0xff] }
  0xa4   : > { %v1130_v61 = vadd.f32 %v2713_v31, %v1082_v36  ;;  %v1084_v18 = vld [vmem:[#allocation2 + $0x20] sm:$0xff]  ;;  %v1085_v62 = vld [vmem:[#allocation2 + $0x28] sm:$0xff]  ;;  %v1131_v23 = vadd.f32 %v2714_v43, %v1083_v56 }
  0xa5   : > { %v1132_v55 = vadd.f32 %v2715_v15, %v1084_v18  ;;  %v1133_v29 = vadd.f32 %v2716_v52, %v1085_v62  ;;  %v1086_v24 = vld [vmem:[#allocation2 + $0x30] sm:$0xff]  ;;  %v1087_v49 = vld [vmem:[#allocation2 + $0x38] sm:$0xff]  ;;  %1140 = vst.msk [vmem:[#allocation2] sm:$0xff] %vm275_vm0, %v1128_v59  ;;  %1141 = vst.msk [vmem:[#allocation2 + $0x8] sm:$0xff] %vm275_vm0, %v1129_v41 }
  0xa6   : > { %v1088_v19 = vld [vmem:[#allocation2 + $0x40] sm:$0xff]  ;;  %1142 = vst.msk [vmem:[#allocation2 + $0x10] sm:$0xff] %vm275_vm0, %v1130_v61  ;;  %v1134_v10 = vadd.f32 %v2717_v0, %v1086_v24  ;;  %v1135_v42 = vadd.f32 %v2718_v12, %v1087_v49  ;;  %1143 = vst.msk [vmem:[#allocation2 + $0x18] sm:$0xff] %vm275_vm0, %v1131_v23  ;;  %v2721_v61 = vld [vmem:[#allocation5_spill] sm:$0xff] }
  0xa7   : > { %v1136_v13 = vadd.f32 %v2200_v25, %v1088_v19  ;;  %v1089_v17 = vld [vmem:[#allocation2 + $0x48] sm:$0xff]  ;;  %1144 = vst.msk [vmem:[#allocation2 + $0x20] sm:$0xff] %vm275_vm0, %v1132_v55  ;;  %1145 = vst.msk [vmem:[#allocation2 + $0x28] sm:$0xff] %vm275_vm0, %v1133_v29  ;;  %v2722_v18 = vld [vmem:[#allocation6_spill] sm:$0xff] }
  0xa8   : > { %v1090_v54 = vld [vmem:[#allocation2 + $0x50] sm:$0xff]  ;;  %v1091_v63 = vld [vmem:[#allocation2 + $0x58] sm:$0xff]  ;;  %v1137_v53 = vadd.f32 %v2206_v14, %v1089_v17  ;;  %1146 = vst.msk [vmem:[#allocation2 + $0x30] sm:$0xff] %vm275_vm0, %v1134_v10  ;;  %1147 = vst.msk [vmem:[#allocation2 + $0x38] sm:$0xff] %vm275_vm0, %v1135_v42 }
  0xa9   : > { %v1138_v16 = vadd.f32 %v2214_v2, %v1090_v54  ;;  %v1139_v48 = vadd.f32 %v2222_v37, %v1091_v63  ;;  %1148 = vst.msk [vmem:[#allocation2 + $0x40] sm:$0xff] %vm275_vm0, %v1136_v13  ;;  %v2723_v23 = vld [vmem:[#allocation7_spill] sm:$0xff]  ;;  %v2724_v55 = vld [vmem:[#allocation8_spill] sm:$0xff]  ;;  %v2725_v29 = vld [vmem:[#allocation9_spill] sm:$0xff] }
  0xaa   : > { %1149 = vst.msk [vmem:[#allocation2 + $0x48] sm:$0xff] %vm275_vm0, %v1137_v53  ;;  %v2726_v10 = vld [vmem:[#allocation63_spill] sm:$0xff]  ;;  %v2727_v42 = vld [vmem:[#allocation64_spill] sm:$0xff]  ;;  %v2728_v17 = vld [vmem:[#allocation65_spill] sm:$0xff] }
  0xab   : > { %1150 = vst.msk [vmem:[#allocation2 + $0x50] sm:$0xff] %vm275_vm0, %v1138_v16  ;;  %1151 = vst.msk [vmem:[#allocation2 + $0x58] sm:$0xff] %vm275_vm0, %v1139_v48  ;;  %v2729_v48 = vld [vmem:[#allocation66_spill] sm:$0xff] }
  0xac   : > { %v1152_v25 = vld [vmem:[#allocation2] sm:$0xff]  ;;  %v1153_v27 = vld [vmem:[#allocation2 + $0x8] sm:$0xff] }
  0xad   : > { %v1154_v8 = vld [vmem:[#allocation2 + $0x10] sm:$0xff]  ;;  %v1200_v14 = vadd.f32 %v2230_v11, %v1152_v25  ;;  %v1201_v2 = vadd.f32 %v2232_v47, %v1153_v27  ;;  %v1155_v46 = vld [vmem:[#allocation2 + $0x18] sm:$0xff]  ;;  %v2730_v27 = vld [vmem:[#allocation67_spill] sm:$0xff] }
  0xae   : > { %v1202_v37 = vadd.f32 %v2234_v21, %v1154_v8  ;;  %v1156_v58 = vld [vmem:[#allocation2 + $0x20] sm:$0xff]  ;;  %v1157_v38 = vld [vmem:[#allocation2 + $0x28] sm:$0xff]  ;;  %v1203_v50 = vadd.f32 %v2236_v44, %v1155_v46 }
  0xaf   : > { %v1204_v39 = vadd.f32 %v2244_v1, %v1156_v58  ;;  %v1205_v40 = vadd.f32 %v2246_v9, %v1157_v38  ;;  %v1158_v36 = vld [vmem:[#allocation2 + $0x30] sm:$0xff]  ;;  %v1159_v45 = vld [vmem:[#allocation2 + $0x38] sm:$0xff]  ;;  %1212 = vst.msk [vmem:[#allocation2] sm:$0xff] %vm275_vm0, %v1200_v14  ;;  %1213 = vst.msk [vmem:[#allocation2 + $0x8] sm:$0xff] %vm275_vm0, %v1201_v2 }
  0xb0   : > { %v1160_v59 = vld [vmem:[#allocation2 + $0x40] sm:$0xff]  ;;  %1214 = vst.msk [vmem:[#allocation2 + $0x10] sm:$0xff] %vm275_vm0, %v1202_v37  ;;  %v1206_v11 = vadd.f32 %v2248_v6, %v1158_v36  ;;  %v1207_v47 = vadd.f32 %v2250_v30, %v1159_v45  ;;  %1215 = vst.msk [vmem:[#allocation2 + $0x18] sm:$0xff] %vm275_vm0, %v1203_v50  ;;  %v2720_v9 = vld [vmem:[#allocation4_spill] sm:$0xff] }
  0xb1   : > { %v2719_v21 = vld [vmem:[#allocation3_spill] sm:$0xff]  ;;  %v1161_v44 = vld [vmem:[#allocation2 + $0x48] sm:$0xff]  ;;  %1216 = vst.msk [vmem:[#allocation2 + $0x20] sm:$0xff] %vm275_vm0, %v1204_v39  ;;  %1217 = vst.msk [vmem:[#allocation2 + $0x28] sm:$0xff] %vm275_vm0, %v1205_v40 }
  0xb2   : > { %v1208_v60 = vadd.f32 %v2719_v21, %v1160_v59  ;;  %v1162_v41 = vld [vmem:[#allocation2 + $0x50] sm:$0xff]  ;;  %v1163_v1 = vld [vmem:[#allocation2 + $0x58] sm:$0xff]  ;;  %v1209_v31 = vadd.f32 %v2720_v9, %v1161_v44  ;;  %1218 = vst.msk [vmem:[#allocation2 + $0x30] sm:$0xff] %vm275_vm0, %v1206_v11  ;;  %1219 = vst.msk [vmem:[#allocation2 + $0x38] sm:$0xff] %vm275_vm0, %v1207_v47 }
  0xb3   : > { %v1210_v56 = vadd.f32 %v2721_v61, %v1162_v41  ;;  %v1211_v62 = vadd.f32 %v2722_v18, %v1163_v1  ;;  %v2731_v38 = vld [vmem:[#allocation68_spill] sm:$0xff]  ;;  %v2732_v39 = vld [vmem:[#allocation69_spill] sm:$0xff] }
  0xb4   : > { %1220 = vst.msk [vmem:[#allocation2 + $0x40] sm:$0xff] %vm275_vm0, %v1208_v60  ;;  %1221 = vst.msk [vmem:[#allocation2 + $0x48] sm:$0xff] %vm275_vm0, %v1209_v31 }
  0xb5   : > { %1222 = vst.msk [vmem:[#allocation2 + $0x50] sm:$0xff] %vm275_vm0, %v1210_v56  ;;  %1223 = vst.msk [vmem:[#allocation2 + $0x58] sm:$0xff] %vm275_vm0, %v1211_v62 }
  0xb6   : > { %v1224_v6 = vld [vmem:[#allocation2] sm:$0xff]  ;;  %v1225_v30 = vld [vmem:[#allocation2 + $0x8] sm:$0xff] }
  0xb7   : > { %v1226_v43 = vld [vmem:[#allocation2 + $0x10] sm:$0xff]  ;;  %v1272_v15 = vadd.f32 %v2723_v23, %v1224_v6  ;;  %v1273_v52 = vadd.f32 %v2724_v55, %v1225_v30  ;;  %v1227_v49 = vld [vmem:[#allocation2 + $0x18] sm:$0xff] }
  0xb8   : > { %v1274_v24 = vadd.f32 %v2725_v29, %v1226_v43  ;;  %v1228_v19 = vld [vmem:[#allocation2 + $0x20] sm:$0xff]  ;;  %v1229_v0 = vld [vmem:[#allocation2 + $0x28] sm:$0xff]  ;;  %v1275_v12 = vadd.f32 %v2726_v10, %v1227_v49 }
  0xb9   : > { %v1276_v13 = vadd.f32 %v2727_v42, %v1228_v19  ;;  %v1277_v54 = vadd.f32 %v2728_v17, %v1229_v0  ;;  %v1230_v63 = vld [vmem:[#allocation2 + $0x30] sm:$0xff]  ;;  %v1231_v53 = vld [vmem:[#allocation2 + $0x38] sm:$0xff]  ;;  %1284 = vst.msk [vmem:[#allocation2] sm:$0xff] %vm275_vm0, %v1272_v15  ;;  %1285 = vst.msk [vmem:[#allocation2 + $0x8] sm:$0xff] %vm275_vm0, %v1273_v52 }
  0xba   : > { %1286 = vst.msk [vmem:[#allocation2 + $0x10] sm:$0xff] %vm275_vm0, %v1274_v24  ;;  %v1278_v25 = vadd.f32 %v2729_v48, %v1230_v63  ;;  %v1279_v8 = vadd.f32 %v2730_v27, %v1231_v53  ;;  %1287 = vst.msk [vmem:[#allocation2 + $0x18] sm:$0xff] %vm275_vm0, %v1275_v12 }
  0xbb   : > { %v1232_v16 = vld [vmem:[#allocation2 + $0x40] sm:$0xff]  ;;  %v1233_v2 = vld [vmem:[#allocation2 + $0x48] sm:$0xff]  ;;  %1288 = vst.msk [vmem:[#allocation2 + $0x20] sm:$0xff] %vm275_vm0, %v1276_v13  ;;  %1289 = vst.msk [vmem:[#allocation2 + $0x28] sm:$0xff] %vm275_vm0, %v1277_v54 }
  0xbc   : > { %v1280_v14 = vadd.f32 %v2283_v7, %v1232_v16  ;;  %v1234_v37 = vld [vmem:[#allocation2 + $0x50] sm:$0xff]  ;;  %v1235_v46 = vld [vmem:[#allocation2 + $0x58] sm:$0xff]  ;;  %v1281_v58 = vadd.f32 %v2285_v5, %v1233_v2  ;;  %1290 = vst.msk [vmem:[#allocation2 + $0x30] sm:$0xff] %vm275_vm0, %v1278_v25  ;;  %1291 = vst.msk [vmem:[#allocation2 + $0x38] sm:$0xff] %vm275_vm0, %v1279_v8 }
  0xbd   : > { %v1282_v50 = vadd.f32 %v2731_v38, %v1234_v37  ;;  %v1283_v40 = vadd.f32 %v2732_v39, %v1235_v46 }
  0xbe   : > { %1292 = vst.msk [vmem:[#allocation2 + $0x40] sm:$0xff] %vm275_vm0, %v1280_v14  ;;  %1293 = vst.msk [vmem:[#allocation2 + $0x48] sm:$0xff] %vm275_vm0, %v1281_v58 }
  0xbf   : > { %1294 = vst.msk [vmem:[#allocation2 + $0x50] sm:$0xff] %vm275_vm0, %v1282_v50  ;;  %1295 = vst.msk [vmem:[#allocation2 + $0x58] sm:$0xff] %vm275_vm0, %v1283_v40 }
  0xc0   : > { %v1296_v7 = vld [vmem:[#allocation2] sm:$0xff]  ;;  %v1297_v36 = vld [vmem:[#allocation2 + $0x8] sm:$0xff] }
  0xc1   : > { %v1298_v45 = vld [vmem:[#allocation2 + $0x10] sm:$0xff]  ;;  %v1344_v5 = vadd.f32 %v2295_v57, %v1296_v7  ;;  %v1345_v59 = vadd.f32 %v2301_v22, %v1297_v36  ;;  %v1299_v47 = vld [vmem:[#allocation2 + $0x18] sm:$0xff] }
  0xc2   : > { %v1346_v11 = vadd.f32 %v2309_v3, %v1298_v45  ;;  %v1300_v21 = vld [vmem:[#allocation2 + $0x20] sm:$0xff]  ;;  %v1301_v60 = vld [vmem:[#allocation2 + $0x28] sm:$0xff]  ;;  %v1347_v44 = vadd.f32 %v2317_v26, %v1299_v47 }
  0xc3   : > { %v1348_v41 = vadd.f32 %v2322_v33, %v1300_v21  ;;  %v1349_v1 = vadd.f32 %v2324_v51, %v1301_v60  ;;  %v1302_v9 = vld [vmem:[#allocation2 + $0x30] sm:$0xff]  ;;  %v1303_v31 = vld [vmem:[#allocation2 + $0x38] sm:$0xff]  ;;  %1356 = vst.msk [vmem:[#allocation2] sm:$0xff] %vm275_vm0, %v1344_v5  ;;  %1357 = vst.msk [vmem:[#allocation2 + $0x8] sm:$0xff] %vm275_vm0, %v1345_v59 }
  0xc4   : > { %1358 = vst.msk [vmem:[#allocation2 + $0x10] sm:$0xff] %vm275_vm0, %v1346_v11  ;;  %v1350_v57 = vadd.f32 %v2326_v32, %v1302_v9  ;;  %v1351_v22 = vadd.f32 %v2328_v20, %v1303_v31  ;;  %1359 = vst.msk [vmem:[#allocation2 + $0x18] sm:$0xff] %vm275_vm0, %v1347_v44 }
  0xc5   : > { %v1304_v61 = vld [vmem:[#allocation2 + $0x40] sm:$0xff]  ;;  %v1305_v26 = vld [vmem:[#allocation2 + $0x48] sm:$0xff]  ;;  %1360 = vst.msk [vmem:[#allocation2 + $0x20] sm:$0xff] %vm275_vm0, %v1348_v41  ;;  %1361 = vst.msk [vmem:[#allocation2 + $0x28] sm:$0xff] %vm275_vm0, %v1349_v1 }
  0xc6   : > { %v1352_v3 = vadd.f32 %v2333_v34, %v1304_v61  ;;  %v1306_v33 = vld [vmem:[#allocation2 + $0x50] sm:$0xff]  ;;  %v1307_v56 = vld [vmem:[#allocation2 + $0x58] sm:$0xff]  ;;  %v1353_v51 = vadd.f32 %v2335_v35, %v1305_v26  ;;  %1362 = vst.msk [vmem:[#allocation2 + $0x30] sm:$0xff] %vm275_vm0, %v1350_v57  ;;  %1363 = vst.msk [vmem:[#allocation2 + $0x38] sm:$0xff] %vm275_vm0, %v1351_v22 }
  0xc7   : > { %v1354_v18 = vadd.f32 %v2337_v4, %v1306_v33  ;;  %v1355_v62 = vadd.f32 %v2339_v28, %v1307_v56 }
  0xc8   : > { %1364 = vst.msk [vmem:[#allocation2 + $0x40] sm:$0xff] %vm275_vm0, %v1352_v3  ;;  %1365 = vst.msk [vmem:[#allocation2 + $0x48] sm:$0xff] %vm275_vm0, %v1353_v51 }
  0xc9   : > { %1366 = vst.msk [vmem:[#allocation2 + $0x50] sm:$0xff] %vm275_vm0, %v1354_v18  ;;  %1367 = vst.msk [vmem:[#allocation2 + $0x58] sm:$0xff] %vm275_vm0, %v1355_v62 }
  0xca   : > { %v1368_v32 = vld [vmem:[#allocation2] sm:$0xff]  ;;  %v1369_v20 = vld [vmem:[#allocation2 + $0x8] sm:$0xff] }
  0xcb   : > { %v1370_v34 = vld [vmem:[#allocation2 + $0x10] sm:$0xff]  ;;  %1380 = vst.msk [vmem:[%s238_s24] sm:$0xff] %vm275_vm0, %v1368_v32  ;;  %1381 = vst.msk [vmem:[%s238_s24 + $0x8] sm:$0xff] %vm275_vm0, %v1369_v20  ;;  %v1371_v35 = vld [vmem:[#allocation2 + $0x18] sm:$0xff] }
  0xcc   : > { %1382 = vst.msk [vmem:[%s238_s24 + $0x10] sm:$0xff] %vm275_vm0, %v1370_v34  ;;  %v1372_v4 = vld [vmem:[#allocation2 + $0x20] sm:$0xff]  ;;  %v1373_v28 = vld [vmem:[#allocation2 + $0x28] sm:$0xff]  ;;  %1383 = vst.msk [vmem:[%s238_s24 + $0x18] sm:$0xff] %vm275_vm0, %v1371_v35 }
  0xcd   : > { %1384 = vst.msk [vmem:[%s238_s24 + $0x20] sm:$0xff] %vm275_vm0, %v1372_v4  ;;  %1385 = vst.msk [vmem:[%s238_s24 + $0x28] sm:$0xff] %vm275_vm0, %v1373_v28  ;;  %v1374_v6 = vld [vmem:[#allocation2 + $0x30] sm:$0xff]  ;;  %v1375_v30 = vld [vmem:[#allocation2 + $0x38] sm:$0xff] }
  0xce   : > { %1386 = vst.msk [vmem:[%s238_s24 + $0x30] sm:$0xff] %vm275_vm0, %v1374_v6  ;;  %1387 = vst.msk [vmem:[%s238_s24 + $0x38] sm:$0xff] %vm275_vm0, %v1375_v30 }
  0xcf   : > { %v1376_v43 = vld [vmem:[#allocation2 + $0x40] sm:$0xff]  ;;  %v1377_v23 = vld [vmem:[#allocation2 + $0x48] sm:$0xff] }
  0xd0   : > { %1388 = vst.msk [vmem:[%s238_s24 + $0x40] sm:$0xff] %vm275_vm0, %v1376_v43  ;;  %v1378_v15 = vld [vmem:[#allocation2 + $0x50] sm:$0xff]  ;;  %v1379_v55 = vld [vmem:[#allocation2 + $0x58] sm:$0xff]  ;;  %1389 = vst.msk [vmem:[%s238_s24 + $0x48] sm:$0xff] %vm275_vm0, %v1377_v23 }
  0xd1   : > { %1390 = vst.msk [vmem:[%s238_s24 + $0x50] sm:$0xff] %vm275_vm0, %v1378_v15  ;;  %1391 = vst.msk [vmem:[%s238_s24 + $0x58] sm:$0xff] %vm275_vm0, %v1379_v55 }
  0xd2 PF: > { %s12_s11 = sadd.s32 1, %s1682_s11   ;;  %s2733_s9 = smov %s1678_s10 }
  0xd3   : > { %p9_p5 = scmp.ge.s32.totalorder %s12_s11, 4   ;;  %s2734_s10 = smov %s2736_s12 }
  0xd5   :  { %11 = sbr.rel (!%p9_p5) target bundleno = 2 (0x2), region = 76 }

</bundles_post_ra>
